<compile_context>
chip_gen: v5e
topology: v5e:2x2
jax: 0.10.0
libtpu: 0.0.40
codegen_flags: <defaults>
</compile_context>

<pallas_src>
import numpy as np
import jax
import jax.numpy as jnp
from jax import lax
from jax.experimental import pallas as pl
from jax.experimental.pallas import tpu as pltpu

CHANNELS = 32          # input channels
REDUCTION = 16         # channel-attention reduction ratio -> hidden Cr = 2
KSIZE = 7              # spatial-attention conv kernel size


def cbam_kernel(x_ref, w1_ref, w2t_ref, m_ref, o_ref):
    # x_ref  : (Bt, C, HW)  lane-dense input block (several batch elements)
    # w1_ref : (Cr, C)      fc1 weight rows (1x1 conv, bias-free)
    # w2t_ref: (Cr, C)      fc2 weight transposed (rows broadcast over lanes)
    # m_ref  : (2*HW, HW)   bf16 banded 7x7-conv matrix [M_avg; M_max],
    #                       avg half pre-scaled by 1/C, zero padding folded in
    # o_ref  : (Bt, C, HW)  output block
    x = x_ref[...].astype(jnp.float32)            # (Bt, C, HW)
    Bt, C, HW = x.shape
    Cr = w1_ref.shape[0]

    # ---------------- channel attention (pure VPU/XLU, no MXU) ----------------
    avg_c = jnp.sum(x, axis=2) * (1.0 / HW)       # adaptive avg pool -> (Bt, C)
    max_c = jnp.max(x, axis=2)                    # adaptive max pool -> (Bt, C)
    s = jnp.concatenate([avg_c, max_c], axis=0)   # (2*Bt, C)

    w1 = w1_ref[...].astype(jnp.float32)          # (Cr, C)
    w2t = w2t_ref[...].astype(jnp.float32)        # (Cr, C)
    # Fused shared MLP: sigmoid( w2 @ (relu(w1@avg) + relu(w1@max)) )
    # (valid because fc1/fc2 are bias-free in the module).
    ca_logits = jnp.zeros((Bt, C), jnp.float32)
    for r in range(Cr):                           # Cr is tiny and static (=2)
        h_r = jnp.maximum(
            jnp.sum(s * w1[r:r + 1, :], axis=1, keepdims=True), 0.0)  # (2*Bt, 1)
        ca_logits = ca_logits + (h_r[:Bt] + h_r[Bt:]) * w2t[r:r + 1, :]
    ca = jax.nn.sigmoid(ca_logits)                # (Bt, C)
    xc = x * ca[:, :, None]                       # (Bt, C, HW)

    # ---------------- spatial attention: 7x7 conv as one bf16 MXU matmul -----
    avg_s = jnp.sum(xc, axis=1)                   # (Bt, HW); 1/C folded into M
    max_s = jnp.max(xc, axis=1)                   # (Bt, HW)
    s_cat = jnp.concatenate([avg_s, max_s], axis=1).astype(jnp.bfloat16)  # (Bt, 2*HW)
    logits = jnp.dot(s_cat, m_ref[...], preferred_element_type=jnp.float32)  # (Bt, HW)
    sa = jax.nn.sigmoid(logits)                   # (Bt, HW)

    o_ref[...] = (xc * sa[:, None, :]).astype(o_ref.dtype)


def _build_spatial_conv_matrix(w_spatial, H, W, C):
    """Lower the 2-in/1-out KxK conv (zero padding K//2) to a (2*H*W, H*W) bf16
    matrix M such that concat([chan_sum, chan_max], -1) @ M == conv output
    (flattened), with the 1/C channel-mean scale folded into the avg half."""
    w = np.asarray(w_spatial, dtype=np.float32)[0]   # (2, K, K)
    K = w.shape[-1]
    pad = K // 2
    HW = H * W
    M = np.zeros((2, HW, HW), dtype=np.float32)
    for i in range(H):
        for j in range(W):
            p = i * W + j
            for dy in range(K):
                ii = i + dy - pad
                if ii < 0 or ii >= H:
                    continue
                for dx in range(K):
                    jj = j + dx - pad
                    if jj < 0 or jj >= W:
                        continue
                    M[:, ii * W + jj, p] = w[:, dy, dx]
    M[0] *= 1.0 / C                                   # fold channel-mean scale
    return jnp.asarray(M.reshape(2 * HW, HW), dtype=jnp.bfloat16)


_M_CACHE = {}


def _get_spatial_conv_matrix(w_spatial, H, W, C):
    """Host-side cache so the O(H*W*K^2) Python build runs once per weights."""
    key = (np.asarray(w_spatial, np.float32).tobytes(), H, W, C)
    m = _M_CACHE.get(key)
    if m is None:
        m = _build_spatial_conv_matrix(w_spatial, H, W, C)
        _M_CACHE[key] = m
    return m


def _tensorcores_per_chip():
    """Heuristic: v5e/v6e expose 1 TensorCore per chip; newer/larger parts 2."""
    try:
        kind = jax.devices()[0].device_kind.lower()
    except Exception:
        return 2
    for tag in ("v5 lite", "v5e", "v5litepod", "v6 lite", "v6e"):
        if tag in kind:
            return 1
    return 2


def _pick_block_batch(B, n_cores):
    """Single-TC: one grid step (bt=B). Multi-TC: fewest steps with an even
    per-core split (grid length a multiple of n_cores)."""
    if n_cores <= 1 or B < 2 * n_cores:
        return B
    for steps in range(n_cores, B + 1, n_cores):
        if B % steps == 0:
            return B // steps
    return B


def cbam_forward(x, w_fc1, w_fc2, w_spatial, block_batch=None):
    """x: (B, C, H, W); w_fc1: (Cr, C); w_fc2: (C, Cr); w_spatial: (1, 2, K, K)."""
    B, C, H, W = x.shape
    Cr = w_fc1.shape[0]
    HW = H * W
    n_cores = _tensorcores_per_chip()
    bt = block_batch if block_batch is not None else _pick_block_batch(B, n_cores)
    assert B % bt == 0, "block batch must divide B"
    grid_steps = B // bt

    x_flat = x.reshape(B, C, HW)                              # lane-dense layout
    w1 = jnp.asarray(w_fc1, jnp.float32)                      # (Cr, C)
    w2t = jnp.asarray(w_fc2, jnp.float32).T                   # (Cr, C)
    m = _get_spatial_conv_matrix(w_spatial, H, W, C)          # (2*HW, HW) bf16

    x_bytes = int(B * C * HW * x.dtype.itemsize)
    cost = pl.CostEstimate(
        flops=int(2 * B * (2 * HW) * HW + 8 * B * C * HW),
        transcendentals=int(B * (C + HW)),
        bytes_accessed=int(2 * x_bytes + m.size * m.dtype.itemsize + 2 * Cr * C * 4),
    )

    out_flat = pl.pallas_call(
        cbam_kernel,
        out_shape=jax.ShapeDtypeStruct((B, C, HW), x.dtype),
        grid=(grid_steps,),
        in_specs=[
            pl.BlockSpec((bt, C, HW), lambda b: (b, 0, 0)),
            pl.BlockSpec((Cr, C), lambda b: (0, 0)),
            pl.BlockSpec((Cr, C), lambda b: (0, 0)),
            pl.BlockSpec((2 * HW, HW), lambda b: (0, 0)),
        ],
        out_specs=pl.BlockSpec((bt, C, HW), lambda b: (b, 0, 0)),
        compiler_params=pltpu.CompilerParams(
            dimension_semantics=("parallel",) if grid_steps > 1 else ("arbitrary",)),
        cost_estimate=cost,
    )(x_flat, w1, w2t, m)
    return out_flat.reshape(B, C, H, W)


def cbam_reference(x, w_fc1, w_fc2, w_spatial):
    """Plain-JAX reference replicating the PyTorch forward (f32 throughout)."""
    avg_p = jnp.mean(x, axis=(2, 3), keepdims=True)
    max_p = jnp.max(x, axis=(2, 3), keepdims=True)

    def mlp(v):
        h = jnp.einsum('rc,bcij->brij', w_fc1, v)
        h = jnp.maximum(h, 0.0)
        return jnp.einsum('cr,brij->bcij', w_fc2, h)

    ca = jax.nn.sigmoid(mlp(avg_p) + mlp(max_p))
    xc = x * ca
    avg_s = jnp.mean(xc, axis=1, keepdims=True)
    max_s = jnp.max(xc, axis=1, keepdims=True)
    s_in = jnp.concatenate([avg_s, max_s], axis=1)            # (B, 2, H, W)
    conv = lax.conv_general_dilated(
        s_in, w_spatial, window_strides=(1, 1),
        padding=[(KSIZE // 2, KSIZE // 2)] * 2,
        dimension_numbers=('NCHW', 'OIHW', 'NCHW'))
    sa = jax.nn.sigmoid(conv)
    return xc * sa


if __name__ == "__main__":
    B, C, H, W = 8, CHANNELS, 16, 16
    Cr = CHANNELS // REDUCTION                                # = 2

    key = jax.random.PRNGKey(0)
    kx, k1, k2, k3 = jax.random.split(key, 4)
    x = jax.random.normal(kx, (B, C, H, W), dtype=jnp.float32)
    # deterministic synthetic parameters (shapes follow the module's __init__)
    w_fc1 = jax.random.normal(k1, (Cr, C), dtype=jnp.float32) * 0.2       # Conv2d(C, C//r, 1, bias=False)
    w_fc2 = jax.random.normal(k2, (C, Cr), dtype=jnp.float32) * 0.2       # Conv2d(C//r, C, 1, bias=False)
    w_spatial = jax.random.normal(k3, (1, 2, KSIZE, KSIZE), dtype=jnp.float32) * 0.1

    out = cbam_forward(x, w_fc1, w_fc2, w_spatial)
    out = jax.block_until_ready(out)

    ref = jax.block_until_ready(cbam_reference(x, w_fc1, w_fc2, w_spatial))
    # bf16 spatial-conv matrix => relax tolerance vs. the all-f32 reference.
    np.testing.assert_allclose(np.asarray(out), np.asarray(ref), rtol=5e-2, atol=5e-2)

    print("KERNEL_OK")
</pallas_src>

<mosaic_0001>
module attributes {stable_mosaic.version = 11 : i64} {
  func.func @cbam_kernel(%arg0: i32, %arg1: memref<4x32x256xf32, #tpu.memory_space<vmem>>, %arg2: memref<2x32xf32, #tpu.memory_space<vmem>>, %arg3: memref<2x32xf32, #tpu.memory_space<vmem>>, %arg4: memref<512x256xbf16, #tpu.memory_space<vmem>>, %arg5: memref<4x32x256xf32, #tpu.memory_space<vmem>>) attributes {dimension_semantics = [#tpu.dimension_semantics<parallel>], iteration_bounds = array<i64: 2>, scalar_prefetch = 0 : i64, scratch_operands = 0 : i64, tpu.core_type = #tpu.core_type<tc>, window_params = [{transform_indices = @transform_0, window_bounds = array<i64: 4, 32, 256>}, {pipeline_mode = #tpu.pipeline_mode<synchronous>, transform_indices = @transform_1, window_bounds = array<i64: 2, 32>}, {pipeline_mode = #tpu.pipeline_mode<synchronous>, transform_indices = @transform_2, window_bounds = array<i64: 2, 32>}, {pipeline_mode = #tpu.pipeline_mode<synchronous>, transform_indices = @transform_3, window_bounds = array<i64: 512, 256>}, {transform_indices = @transform_4, window_bounds = array<i64: 4, 32, 256>}]} {
    %c0 = arith.constant 0 : index
    %c0_0 = arith.constant 0 : index
    %c0_1 = arith.constant 0 : index
    %0 = vector.load %arg1[%c0, %c0_0, %c0_1] : memref<4x32x256xf32, #tpu.memory_space<vmem>>, vector<4x32x256xf32>
    %cst = arith.constant dense<0.000000e+00> : vector<4x32xf32>
    %1 = vector.multi_reduction <add>, %0, %cst [2] : vector<4x32x256xf32> to vector<4x32xf32>
    %cst_2 = arith.constant 3.906250e-03 : f32
    %2 = vector.broadcast %cst_2 : f32 to vector<4x32xf32>
    %3 = arith.mulf %1, %2 : vector<4x32xf32>
    %cst_3 = arith.constant dense<0xFF800000> : vector<4x32xf32>
    %4 = vector.multi_reduction <maximumf>, %0, %cst_3 [2] : vector<4x32x256xf32> to vector<4x32xf32>
    %5 = tpu.concatenate %3, %4 in 0 : vector<4x32xf32>, vector<4x32xf32> -> vector<8x32xf32>
    %c0_4 = arith.constant 0 : index
    %c0_5 = arith.constant 0 : index
    %6 = vector.load %arg2[%c0_4, %c0_5] : memref<2x32xf32, #tpu.memory_space<vmem>>, vector<2x32xf32>
    %c0_6 = arith.constant 0 : index
    %c0_7 = arith.constant 0 : index
    %7 = vector.load %arg3[%c0_6, %c0_7] : memref<2x32xf32, #tpu.memory_space<vmem>>, vector<2x32xf32>
    %cst_8 = arith.constant 0.000000e+00 : f32
    %8 = vector.broadcast %cst_8 : f32 to vector<4x32xf32>
    %9 = vector.extract_strided_slice %6 {offsets = [0, 0], sizes = [1, 32], strides = [1, 1]} : vector<2x32xf32> to vector<1x32xf32>
    %10 = vector.broadcast %9 : vector<1x32xf32> to vector<8x32xf32>
    %11 = arith.mulf %5, %10 : vector<8x32xf32>
    %cst_9 = arith.constant dense<0.000000e+00> : vector<8xf32>
    %12 = vector.multi_reduction <add>, %11, %cst_9 [1] : vector<8x32xf32> to vector<8xf32>
    %13 = vector.shape_cast %12 : vector<8xf32> to vector<8x1xf32>
    %cst_10 = arith.constant 0.000000e+00 : f32
    %14 = vector.broadcast %cst_10 : f32 to vector<8x1xf32>
    %15 = arith.maximumf %13, %14 : vector<8x1xf32>
    %16 = vector.extract_strided_slice %15 {offsets = [0, 0], sizes = [4, 1], strides = [1, 1]} : vector<8x1xf32> to vector<4x1xf32>
    %17 = vector.extract_strided_slice %15 {offsets = [4, 0], sizes = [4, 1], strides = [1, 1]} : vector<8x1xf32> to vector<4x1xf32>
    %18 = arith.addf %16, %17 : vector<4x1xf32>
    %19 = vector.extract_strided_slice %7 {offsets = [0, 0], sizes = [1, 32], strides = [1, 1]} : vector<2x32xf32> to vector<1x32xf32>
    %20 = vector.broadcast %18 : vector<4x1xf32> to vector<4x32xf32>
    %21 = vector.broadcast %19 : vector<1x32xf32> to vector<4x32xf32>
    %22 = arith.mulf %20, %21 : vector<4x32xf32>
    %23 = arith.addf %8, %22 : vector<4x32xf32>
    %24 = vector.extract_strided_slice %6 {offsets = [1, 0], sizes = [1, 32], strides = [1, 1]} : vector<2x32xf32> to vector<1x32xf32>
    %25 = vector.broadcast %24 : vector<1x32xf32> to vector<8x32xf32>
    %26 = arith.mulf %5, %25 : vector<8x32xf32>
    %cst_11 = arith.constant dense<0.000000e+00> : vector<8xf32>
    %27 = vector.multi_reduction <add>, %26, %cst_11 [1] : vector<8x32xf32> to vector<8xf32>
    %28 = vector.shape_cast %27 : vector<8xf32> to vector<8x1xf32>
    %cst_12 = arith.constant 0.000000e+00 : f32
    %29 = vector.broadcast %cst_12 : f32 to vector<8x1xf32>
    %30 = arith.maximumf %28, %29 : vector<8x1xf32>
    %31 = vector.extract_strided_slice %30 {offsets = [0, 0], sizes = [4, 1], strides = [1, 1]} : vector<8x1xf32> to vector<4x1xf32>
    %32 = vector.extract_strided_slice %30 {offsets = [4, 0], sizes = [4, 1], strides = [1, 1]} : vector<8x1xf32> to vector<4x1xf32>
    %33 = arith.addf %31, %32 : vector<4x1xf32>
    %34 = vector.extract_strided_slice %7 {offsets = [1, 0], sizes = [1, 32], strides = [1, 1]} : vector<2x32xf32> to vector<1x32xf32>
    %35 = vector.broadcast %33 : vector<4x1xf32> to vector<4x32xf32>
    %36 = vector.broadcast %34 : vector<1x32xf32> to vector<4x32xf32>
    %37 = arith.mulf %35, %36 : vector<4x32xf32>
    %38 = arith.addf %23, %37 : vector<4x32xf32>
    %39 = arith.negf %38 : vector<4x32xf32>
    %40 = math.exp %39 : vector<4x32xf32>
    %cst_13 = arith.constant 1.000000e+00 : f32
    %41 = vector.broadcast %cst_13 : f32 to vector<4x32xf32>
    %42 = arith.addf %41, %40 : vector<4x32xf32>
    %43 = arith.divf %41, %42 : vector<4x32xf32>
    %44 = vector.shape_cast %43 : vector<4x32xf32> to vector<4x32x1xf32>
    %45 = vector.broadcast %44 : vector<4x32x1xf32> to vector<4x32x256xf32>
    %46 = arith.mulf %0, %45 : vector<4x32x256xf32>
    %cst_14 = arith.constant dense<0.000000e+00> : vector<4x256xf32>
    %47 = vector.multi_reduction <add>, %46, %cst_14 [1] : vector<4x32x256xf32> to vector<4x256xf32>
    %cst_15 = arith.constant dense<0xFF800000> : vector<4x256xf32>
    %48 = vector.multi_reduction <maximumf>, %46, %cst_15 [1] : vector<4x32x256xf32> to vector<4x256xf32>
    %49 = tpu.concatenate %47, %48 in 1 : vector<4x256xf32>, vector<4x256xf32> -> vector<4x512xf32>
    %50 = arith.truncf %49 : vector<4x512xf32> to vector<4x512xbf16>
    %c0_16 = arith.constant 0 : index
    %c0_17 = arith.constant 0 : index
    %51 = vector.load %arg4[%c0_16, %c0_17] : memref<512x256xbf16, #tpu.memory_space<vmem>>, vector<512x256xbf16>
    %cst_18 = arith.constant dense<0.000000e+00> : vector<4x256xf32>
    %52 = tpu.matmul %50, %51, %cst_18 {dimension_numbers = #tpu.dot_dimension_numbers<[1], [0], [0], [1], [0, 0, 1, 1], [], []>} : vector<4x512xbf16>, vector<512x256xbf16>, vector<4x256xf32> -> vector<4x256xf32>
    %53 = arith.negf %52 : vector<4x256xf32>
    %54 = math.exp %53 : vector<4x256xf32>
    %cst_19 = arith.constant 1.000000e+00 : f32
    %55 = vector.broadcast %cst_19 : f32 to vector<4x256xf32>
    %56 = arith.addf %55, %54 : vector<4x256xf32>
    %57 = arith.divf %55, %56 : vector<4x256xf32>
    %58 = vector.shape_cast %57 : vector<4x256xf32> to vector<4x1x256xf32>
    %59 = vector.broadcast %58 : vector<4x1x256xf32> to vector<4x32x256xf32>
    %60 = arith.mulf %46, %59 : vector<4x32x256xf32>
    %c0_20 = arith.constant 0 : index
    %c0_21 = arith.constant 0 : index
    %c0_22 = arith.constant 0 : index
    %61 = vector.load %arg5[%c0_20, %c0_21, %c0_22] : memref<4x32x256xf32, #tpu.memory_space<vmem>>, vector<4x32x256xf32>
    tpu.vector_store %arg5[%c0_20, %c0_21, %c0_22], %60 {strides = array<i32>} : memref<4x32x256xf32, #tpu.memory_space<vmem>>, vector<4x32x256xf32>,
    return
  }
  func.func @transform_0(%arg0: i32) -> (i32, i32, i32) {
    %c0_i32 = arith.constant 0 : i32
    %c0_i32_0 = arith.constant 0 : i32
    %c0_i32_1 = arith.constant 0 : i32
    return %arg0, %c0_i32, %c0_i32_0 : i32, i32, i32
  }
  func.func @transform_1(%arg0: i32) -> (i32, i32) {
    %c0_i32 = arith.constant 0 : i32
    %c0_i32_0 = arith.constant 0 : i32
    %c0_i32_1 = arith.constant 0 : i32
    return %c0_i32, %c0_i32_0 : i32, i32
  }
  func.func @transform_2(%arg0: i32) -> (i32, i32) {
    %c0_i32 = arith.constant 0 : i32
    %c0_i32_0 = arith.constant 0 : i32
    %c0_i32_1 = arith.constant 0 : i32
    return %c0_i32, %c0_i32_0 : i32, i32
  }
  func.func @transform_3(%arg0: i32) -> (i32, i32) {
    %c0_i32 = arith.constant 0 : i32
    %c0_i32_0 = arith.constant 0 : i32
    %c0_i32_1 = arith.constant 0 : i32
    return %c0_i32, %c0_i32_0 : i32, i32
  }
  func.func @transform_4(%arg0: i32) -> (i32, i32, i32) {
    %c0_i32 = arith.constant 0 : i32
    %c0_i32_0 = arith.constant 0 : i32
    %c0_i32_1 = arith.constant 0 : i32
    return %arg0, %c0_i32, %c0_i32_0 : i32, i32, i32
  }
}

</mosaic_0001>

<bundles_post_ra>
// kernel: tpu_custom_call.1
= control target key start
LH: loop header
LB: loop body
LE: loop exit
PB: predicated region body
PF: predicated region fallthrough
CT: control target
= control target key end

     0   :  { %9 = vsyncpa [#allocation3], 0  ;;  %s3047_s0 = inlined_call_operand.hbm [shape: f32[8,32,256], index: 0, kind: input, shape index: {}]   ;;  %s3048_s1 = inlined_call_operand.hbm [shape: f32[2,32], index: 1, kind: input, shape index: {}]   ;;  %s3049_s2 = inlined_call_operand.hbm [shape: f32[2,32], index: 2, kind: input, shape index: {}]   ;;  %s3050_s3 = inlined_call_operand.hbm [shape: bf16[512,256], index: 3, kind: input, shape index: {}]   ;;  %s3051_s4 = inlined_call_operand.hbm [shape: f32[8,32,256], index: 4, kind: output, shape index: {}]  }
   0x1   :  { %11 = vsyncpa [#allocation3 + $0x1], 0 }
   0x2   :  { %12 = vsyncpa [#allocation6], 0 }
   0x3   :  { %13 = vsyncpa [#allocation9], 0 }
   0x4   :  { %14 = vsyncpa [#allocation4], 0 }
   0x5   :  { %16 = vsyncpa [#allocation4 + $0x1], 0  ;;  %s2322_s15 = smov 0   ;;  %s2324_s16 = smov 0  }
   0x6   :  { %s2326_s17 = smov 0   ;;  %s2328_s18 = smov 0  }
   0x7 LB: > { %s2343_s19 = sadd.s32 4294967295, %s2285_s18   ;;  %s1629_s20 = sadd.s32 4294967294, %s2285_s18   ;;  %s2285_s18 = sphi %s2328_s18, %s3118_s18   ;;  %s2281_s17 = sphi %s2326_s17, %s3117_s17   ;;  %s2277_s16 = sphi %s2324_s16, %s3116_s16   ;;  %s2273_s15 = sphi %s2322_s15, %s3115_s15  }
   0x8   : > { %p42_p0 = scmp.ne.s32.totalorder %s2277_s16, %s2273_s15  ;;  %p43_p1 = scmp.eq.s32.totalorder %s2343_s19, 0 }
   0x9   : > { %p129_p2 = scmp.eq.s32.totalorder %s2343_s19, 1  ;;  %p135_p3 = scmp.eq.s32.totalorder %s1629_s20, 1 }
   0xa   : > { %p2352_p4 = por %p43_p1, %p42_p0  ;;  %p1630_p5 = scmp.ge.s32.totalorder %s2285_s18, 1 }
   0xb   : > { %p2357_p6 = por %p135_p3, %p42_p0  ;;  %p142_p7 = scmp.lt.s32.totalorder %s2285_s18, 3 }
   0xc   : > { %s154_s25 = sshll.u32 %s3048_s1, 4  ;;  %s2287_s27 = smov [#allocation5]   ;;  %s155_s25 = int_to_ptr.hbm [resolvable:$true] %s154_s25 }
   0xd   : > { %p2365_p8 = pnand %p1630_p5, %p142_p7  ;;  %s156_s28 = sshll.u32 %s2287_s27, 4  ;;  %s157_s28 = int_to_ptr.vmem [resolvable:$true] %s156_s28 }
   0xe   : > { %s166_s5 = sshll.u32 %s3049_s2, 4  ;;  %s177_s9 = sshll.u32 %s3050_s3, 4  ;;  %s167_s5 = int_to_ptr.hbm [resolvable:$true] %s166_s5  ;;  %s178_s9 = int_to_ptr.hbm [resolvable:$true] %s177_s9 }
   0xf   : > { %p1994_p10 = pneg %p2365_p8  ;;  %s2288_s10 = smov [#allocation7]  }
  0x10   : > { %s168_s11 = sshll.u32 %s2288_s10, 4  ;;  %s2289_s12 = smov [#allocation8]   ;;  %s169_s11 = int_to_ptr.vmem [resolvable:$true] %s168_s11 }
  0x11   : > { %p2377_p11 = pnand %p1994_p10, %p43_p1  ;;  %s179_s13 = sshll.u32 %s2289_s12, 4  ;;  %s180_s13 = int_to_ptr.vmem [resolvable:$true] %s179_s13 }
  0x12   : > { %s2290_s14 = smov 128   ;;  %s2291_s20 = smov 8  }
  0x13   : > { %1997 = dma.hbm_to_vmem [thread:$0]  (!%p2377_p11), %s155_s25, 32, %s157_s28, [#allocation6]  }
  0x14   : > { %2000 = dma.hbm_to_vmem [thread:$0]  (!%p2377_p11), %s167_s5, 32, %s169_s11, [#allocation6]  }
  0x15   : > { %2003 = dma.hbm_to_vmem [thread:$0]  (!%p2377_p11), %s178_s9, 8192, %s180_s13, [#allocation9], %s2290_s14, %s2290_s14, %s2291_s20  }
  0x16   : > { %s2391_s23 = sadd.s32 1, %s2285_s18   ;;  %s29_s25 = sadd.s32 1, %s2281_s17 }
  0x17   : > { %s26_s24 = ssub.s32 %s2285_s18, %s2391_s23  ;;  %p36_p13 = scmp.ne.s32.totalorder %s2281_s17, %s2277_s16 }
  0x18   : > { %p27_p12 = scmp.eq.s32.totalorder %s26_s24, 0  ;;  %p37_p0 = scmp.eq.s32.totalorder %s2285_s18, 0 }
  0x19   : > { %p2015_p3 = scmp.lt.s32.totalorder %s2285_s18, 2  ;;  %p2405_p7 = por %p129_p2, %p36_p13 }
  0x1a   : > { %s2401_s27 = scalar_select %p27_p12, %s2281_s17, %s29_s25  }
  0x1b   : > { %p38_p5 = por %p37_p0, %p36_p13  ;;  %s193_s29 = sand.u32 1, %s2281_s17  }
  0x1c   : > { %s1911_s30 = sshll.u32 %s2285_s18, 8  ;;  %s1635_s5 = sshll.u32 %s193_s29, 8 }
  0x1d   : > { %s203_s8 = scalar_lea.hbm %s3047_s0, %s1911_s30  ;;  %s197_s10 = scalar_lea.vmem [#allocation2], %s1635_s5 }
  0x1e   : > { %s204_s9 = sshll.u32 %s203_s8, 4  ;;  %s206_s11 = sshll.u32 %s197_s10, 4  ;;  %s205_s9 = int_to_ptr.hbm [resolvable:$true] %s204_s9  ;;  %s207_s11 = int_to_ptr.vmem [resolvable:$true] %s206_s11 }
  0x1f   : > { %p2416_p10 = pnand %p2015_p3, %p38_p5  ;;  %s194_s13 = scalar_lea.sflag [#allocation3], %s193_s29 }
  0x20   : > { %s2181_s14 = sshra.s32 %s205_s9, 4  ;;  %s2188_s30 = scalar_lea.hbm %s3047_s0, 512  ;;  %s2182_s14 = int_to_ptr.hbm [resolvable:$true] %s2181_s14 }
  0x21   : > { %s2183_s20 = scalar_lea.hbm %s2182_s14, 256  ;;  %p2185_p11 = pneg %p2416_p10 }
  0x22   : > { %p2184_p2 = scmp.ne.s32.totalorder %s2182_s14, %s2183_s20  ;;  %p2189_p0 = scmp.lt.s32.totalorder %s2182_s14, %s3047_s0 }
  0x23   : > { %p2190_p3 = scmp.lt.s32.totalorder %s2188_s30, %s2183_s20 }
  0x24   : > { %p2186_p12 = pnand %p2185_p11, %p2184_p2 }
  0x25   : > { %p2191_p5 = por %p2190_p3, %p2189_p0 }
  0x26   : > { %p2187_p13 = pneg %p2186_p12 }
  0x28   : > { %p2192_p9 = pnand %p2191_p5, %p2187_p13 }
  0x2a   : > { %2195 = shalt.err (!%p2192_p9)
}
  0x2b   : > { %s2292_s29 = smov 256   ;;  %s2293_s7 = smov 16  }
  0x2c   : > { %2007 = dma.hbm_to_vmem [thread:$0]  (!%p2416_p10), %s205_s9, 4096, %s207_s11, %s194_s13, %s2292_s29, %s2292_s29, %s2293_s7  }
  0x2d   : > { %218 = sbr.rel (%p2365_p8) target bundleno = 961 (0x3c1), region = 36 }
  0x32   : > { %s2433_s8 = sand.u32 1, %s2277_s16  }
  0x33   : > { %s1640_s10 = sshll.u32 %s2433_s8, 8  ;;  %s221_s14 = scalar_lea.sflag [#allocation3], %s2433_s8 }
  0x34   : > { %s2439_s20 = scalar_lea.vmem [#allocation2], %s1640_s10 }
  0x35   : > { %2256 = dma.done.wait (%p2352_p4), %s221_s14, 4096  }
  0x36   : > { %2258 = vsyncadd (%p2352_p4), %s221_s14, 4294963200 }
  0x37   : > { %2260 = dma.done.wait (%p43_p1), [#allocation6], 64  }
  0x38   : > { %2262 = vsyncadd (%p43_p1), [#allocation6], 4294967232 }
  0x39   : > { %2264 = dma.done.wait (%p43_p1), [#allocation9], 8192  }
  0x3a   : > { %2266 = vsyncadd (%p43_p1), [#allocation9], 4294959104  ;;  %v2454_v0 = vld [vmem:[%s2439_s20 + $0x40] sm:$0xff]  ;;  %v2457_v1 = vld [vmem:[%s2439_s20 + $0x48] sm:$0xff]  ;;  %vm432_vm0 = vcmask 130112   ;;  %vm436_vm1 = vcmask 195712  }
  0x3b   : > { %v2460_v2 = vld [vmem:[%s2439_s20 + $0x20] sm:$0xff]  ;;  %v311_v3 = vadd.f32 %v2457_v1, %v2454_v0  ;;  %v2465_v4 = vld [vmem:[%s2439_s20 + $0x28] sm:$0xff]  ;;  %v2478_v9 = vld [vmem:[%s2439_s20 + $0x50] sm:$0xff]  ;;  %v375_v45 = vmax.f32 %v2454_v0, %v2457_v1  ;;  %vm440_vm2 = vcmask 261312   ;;  %vm463_vm3 = vcmask 1041409   ;;  %s2950_s21 = scalar_lea.vmem [#allocation10], %s1640_s10 }
  0x3c   : > { %v2468_v5 = vld [vmem:[%s2439_s20] sm:$0xff]  ;;  %v2471_v6 = vld [vmem:[%s2439_s20 + $0x8] sm:$0xff]  ;;  %v305_v7 = vadd.f32 %v2465_v4, %v2460_v2  ;;  %v2481_v10 = vld [vmem:[%s2439_s20 + $0x58] sm:$0xff]  ;;  %v369_v48 = vmax.f32 %v2460_v2, %v2465_v4  ;;  %vm465_vm4 = vcmask 1042434   ;;  %vm467_vm5 = vcmask 1043459   ;;  %s1977_s26 = sshll.u32 %s2343_s19, 8 }
  0x3d   : > { %v299_v8 = vadd.f32 %v2471_v6, %v2468_v5  ;;  %312 = vadd.xlane.f32.xlu1 %v311_v3  ;;  %v2484_v11 = vld [vmem:[%s2439_s20 + $0x60] sm:$0xff]  ;;  %v2487_v12 = vld [vmem:[%s2439_s20 + $0x68] sm:$0xff]  ;;  %v2490_v13 = vld [vmem:[%s2439_s20 + $0x10] sm:$0xff]  ;;  %v314_v15 = vadd.f32 %v2481_v10, %v2478_v9  ;;  %v363_v38 = vmax.f32 %v2468_v5, %v2471_v6  ;;  %v378_v43 = vmax.f32 %v2478_v9, %v2481_v10  ;;  %s1523_s12 = scalar_lea.hbm %s3051_s4, %s1977_s26  ;;  %s1524_s19 = sshll.u32 %s2950_s21, 4  ;;  %s1525_s19 = int_to_ptr.vmem [resolvable:$true] %s1524_s19 }
  0x3e   : > { %306 = vadd.xlane.f32.xlu2 %v305_v7  ;;  %v2493_v14 = vld [vmem:[%s2439_s20 + $0x18] sm:$0xff]  ;;  %v317_v16 = vadd.f32 %v2487_v12, %v2484_v11  ;;  %v2502_v18 = vld [vmem:[%s2439_s20 + $0x90] sm:$0xff]  ;;  %v2510_v22 = vld [vmem:[%s2439_s20 + $0x80] sm:$0xff]  ;;  %v381_v49 = vmax.f32 %v2484_v11, %v2487_v12  ;;  %v3052_v7 = vlaneseq  ;;  %vm514_vm6 = vcmask 1045509   ;;  %s1526_s13 = sshll.u32 %s1523_s12, 4  ;;  %s1511_s24 = scalar_lea.sflag [#allocation4], %s2433_s8  ;;  %s1527_s13 = int_to_ptr.hbm [resolvable:$true] %s1526_s13 }
  0x3f   : > { %300 = vadd.xlane.f32.xlu0 %v299_v8  ;;  %v302_v17 = vadd.f32 %v2493_v14, %v2490_v13  ;;  %v2505_v19 = vld [vmem:[%s2439_s20 + $0x98] sm:$0xff]  ;;  %v273_v20 = vld [vmem:[%s2439_s20 + $0x30] sm:$0xff]  ;;  %v2513_v23 = vld [vmem:[%s2439_s20 + $0x88] sm:$0xff]  ;;  %v366_v39 = vmax.f32 %v2490_v13, %v2493_v14  ;;  %vm516_vm7 = vcmask 1046534   ;;  %vm518_vm8 = vcmask 1047559   ;;  %s2225_s25 = sshra.s32 %s1527_s13, 4  ;;  %s2226_s25 = int_to_ptr.hbm [resolvable:$true] %s2225_s25 }
  0x40   : > { %v274_v21 = vld [vmem:[%s2439_s20 + $0x38] sm:$0xff]  ;;  %v326_v24 = vadd.f32 %v2505_v19, %v2502_v18  ;;  %v323_v26 = vadd.f32 %v2513_v23, %v2510_v22  ;;  %v2520_v27 = vld [vmem:[%s2439_s20 + $0xa0] sm:$0xff]  ;;  %v2523_v28 = vld [vmem:[%s2439_s20 + $0xa8] sm:$0xff]  ;;  %v390_v53 = vmax.f32 %v2502_v18, %v2505_v19  ;;  %v387_v55 = vmax.f32 %v2510_v22, %v2513_v23  ;;  %s2227_s30 = scalar_lea.hbm %s2226_s25, 256  ;;  %s2231_s29 = scalar_lea.hbm %s3051_s4, 512 }
  0x41   : > { %v308_v25 = vadd.f32 %v274_v21, %v273_v20  ;;  %v2526_v29 = vld [vmem:[%s2439_s20 + $0xc0] sm:$0xff]  ;;  %v2529_v30 = vld [vmem:[%s2439_s20 + $0xc8] sm:$0xff]  ;;  %v2532_v31 = vld [vmem:[%s2439_s20 + $0x70] sm:$0xff]  ;;  %v329_v33 = vadd.f32 %v2523_v28, %v2520_v27  ;;  %v393_v57 = vmax.f32 %v2520_v27, %v2523_v28  ;;  %v372_v58 = vmax.f32 %v273_v20, %v274_v21  ;;  %p2228_p1 = scmp.ne.s32.totalorder %s2226_s25, %s2227_s30  ;;  %p2232_p9 = scmp.lt.s32.totalorder %s2226_s25, %s3051_s4 }
  0x42   : > { %v2535_v32 = vld [vmem:[%s2439_s20 + $0x78] sm:$0xff]  ;;  %v335_v34 = vadd.f32 %v2529_v30, %v2526_v29  ;;  %v2544_v36 = vld [vmem:[%s2439_s20 + $0xd0] sm:$0xff]  ;;  %v2562_v46 = vld [vmem:[%s2439_s20 + $0xe0] sm:$0xff]  ;;  %v399_v61 = vmax.f32 %v2526_v29, %v2529_v30  ;;  %vm521_vm9 = vcmask 1043456   ;;  %vm527_vm10 = vcmask 261120   ;;  %p2233_p10 = scmp.lt.s32.totalorder %s2231_s29, %s2227_s30 }
  0x43   : > { %v320_v35 = vadd.f32 %v2535_v32, %v2532_v31  ;;  %v2547_v37 = vld [vmem:[%s2439_s20 + $0xd8] sm:$0xff]  ;;  %v289_v41 = vld [vmem:[%s2439_s20 + $0xb0] sm:$0xff]  ;;  %v2565_v47 = vld [vmem:[%s2439_s20 + $0xe8] sm:$0xff]  ;;  %v384_v56 = vmax.f32 %v2532_v31, %v2535_v32  ;;  %p2229_p4 = pnand %p2228_p1, %p2405_p7 }
  0x44   : > { %v338_v40 = vadd.f32 %v2547_v37, %v2544_v36  ;;  %v290_v42 = vld [vmem:[%s2439_s20 + $0xb8] sm:$0xff]  ;;  %v341_v50 = vadd.f32 %v2565_v47, %v2562_v46  ;;  %v2574_v51 = vld [vmem:[%s2439_s20 + $0xf0] sm:$0xff]  ;;  %v402_v59 = vmax.f32 %v2544_v36, %v2547_v37  ;;  %v405_v63 = vmax.f32 %v2562_v46, %v2565_v47  ;;  %p2234_p2 = por %p2233_p10, %p2232_p9 }
  0x45   : > { %315 = vadd.xlane.f32.xlu1 %v314_v15  ;;  %v332_v44 = vadd.f32 %v290_v42, %v289_v41  ;;  %v2577_v52 = vld [vmem:[%s2439_s20 + $0xf8] sm:$0xff]  ;;  %v396_v60 = vmax.f32 %v289_v41, %v290_v42  ;;  %p2230_p8 = pneg %p2229_p4 }
  0x46   : > { %318 = vadd.xlane.f32.xlu2 %v317_v16  ;;  %3077 = vst [vmem:[#allocation15_spill] sm:$0xff] %v2577_v52  ;;  %v344_v54 = vadd.f32 %v2577_v52, %v2574_v51  ;;  %v408_v62 = vmax.f32 %v2574_v51, %v2577_v52  ;;  %v2598_v16 = vand.u32 127, %v3052_v7 }
  0x47   : > { %303 = vadd.xlane.f32.xlu0 %v302_v17  ;;  %p2235_p11 = pnand %p2234_p2, %p2230_p8 }
  0x48   : > { %v2601_v20 = vadd.s32 4294967280, %v2598_v16 }
  0x4d   : > { %327 = vadd.xlane.f32.xlu1 %v326_v24  ;;  %v2604_v24 = vadd.s32 4294967288, %v2598_v16 }
  0x4e   : > { %309 = vadd.xlane.f32.xlu2 %v308_v25 }
  0x4f   : > { %324 = vadd.xlane.f32.xlu0 %v323_v26 }
  0x55   : > { %330 = vadd.xlane.f32.xlu1 %v329_v33 }
  0x56   : > { %336 = vadd.xlane.f32.xlu2 %v335_v34 }
  0x57   : > { %321 = vadd.xlane.f32.xlu0 %v320_v35 }
  0x5d   : > { %364 = vmax.xlane.f32.xlu1 %v363_v38 }
  0x5e   : > { %367 = vmax.xlane.f32.xlu2 %v366_v39 }
  0x5f   : > { %339 = vadd.xlane.f32.xlu0 %v338_v40 }
  0x65   : > { %379 = vmax.xlane.f32.xlu1 %v378_v43 }
  0x66   : > { %333 = vadd.xlane.f32.xlu2 %v332_v44 }
  0x67   : > { %376 = vmax.xlane.f32.xlu0 %v375_v45 }
  0x6d   : > { %370 = vmax.xlane.f32.xlu1 %v369_v48 }
  0x6e   : > { %382 = vmax.xlane.f32.xlu2 %v381_v49 }
  0x6f   : > { %342 = vadd.xlane.f32.xlu0 %v341_v50 }
  0x75   : > { %391 = vmax.xlane.f32.xlu1 %v390_v53 }
  0x76   : > { %345 = vadd.xlane.f32.xlu2 %v344_v54 }
  0x77   : > { %388 = vmax.xlane.f32.xlu0 %v387_v55  ;;  %v2615_v55 = vadd.s32 4294967272, %v2598_v16 }
  0x7d   : > { %385 = vmax.xlane.f32.xlu1 %v384_v56 }
  0x7e   : > { %394 = vmax.xlane.f32.xlu2 %v393_v57 }
  0x7f   : > { %373 = vmax.xlane.f32.xlu0 %v372_v58 }
  0x85   : > { %403 = vmax.xlane.f32.xlu1 %v402_v59 }
  0x86   : > { %397 = vmax.xlane.f32.xlu2 %v396_v60 }
  0x87   : > { %400 = vmax.xlane.f32.xlu0 %v399_v61 }
  0x8d   : > { %409 = vmax.xlane.f32.xlu1 %v408_v62 }
  0x8f   : > { %406 = vmax.xlane.f32.xlu0 %v405_v63 }
  0xb0   : > { %v313_v3 = vpop.xlane.xlu1 %312 }
  0xb1   : > { %v307_v8 = vpop.xlane.xlu2 %306  ;;  %v351_v17 = vmul.f32 0.00390625, %v313_v3 }
  0xb2   : > { %v301_v15 = vpop.xlane.xlu0 %300  ;;  %v349_v21 = vmul.f32 0.00390625, %v307_v8 }
  0xb3   : > { %v347_v25 = vmul.f32 0.00390625, %v301_v15  ;;  %v442_v39 = vperm.slane %v351_v17, %v2598_v16 }
  0xb4   : > { %v435_v40 = vperm.slane %v349_v21, %v2601_v20 }
  0xb5   : > { %v429_v42 = vperm.slane %v347_v25, %v2598_v16 }
  0xb8   : > { %v316_v26 = vpop.xlane.xlu1 %315 }
  0xb9   : > { %v352_v33 = vmul.f32 0.00390625, %v316_v26  ;;  %v319_v34 = vpop.xlane.xlu2 %318 }
  0xba   : > { %v304_v35 = vpop.xlane.xlu0 %303  ;;  %v353_v54 = vmul.f32 0.00390625, %v319_v34 }
  0xbb   : > { %v348_v38 = vmul.f32 0.00390625, %v304_v35  ;;  %v443_v41 = vperm.slane %v352_v33, %v2604_v24 }
  0xbc   : > { %v445_v58 = vperm.slane %v353_v54, %v2601_v20 }
  0xbd   : > { %v431_v43 = vperm.slane %v348_v38, %v2604_v24  ;;  %v444_v44 = vsel %vm432_vm0, %v443_v41, %v442_v39 }
  0xbe   : > { %v446_v3 = vsel %vm436_vm1, %v445_v58, %v444_v44 }
  0xbf   : > { %v433_v45 = vsel %vm432_vm0, %v431_v43, %v429_v42 }
  0xc0   : > { %v437_v48 = vsel %vm436_vm1, %v435_v40, %v433_v45  ;;  %v328_v49 = vpop.xlane.xlu1 %327 }
  0xc1   : > { %v310_v50 = vpop.xlane.xlu2 %309  ;;  %v356_v45 = vmul.f32 0.00390625, %v328_v49 }
  0xc2   : > { %v325_v53 = vpop.xlane.xlu0 %324  ;;  %v350_v56 = vmul.f32 0.00390625, %v310_v50 }
  0xc3   : > { %v450_v58 = vperm.slane %v356_v45, %v2604_v24 }
  0xc4   : > { %v439_v61 = vperm.slane %v350_v56, %v2615_v55 }
  0xc6   : > { %v441_v8 = vsel %vm440_vm2, %v439_v61, %v437_v48  ;;  %v355_v48 = vmul.f32 0.00390625, %v325_v53 }
  0xc8   : > { %v331_v57 = vpop.xlane.xlu1 %330 }
  0xc9   : > { %v337_v59 = vpop.xlane.xlu2 %336  ;;  %v357_v56 = vmul.f32 0.00390625, %v331_v57 }
  0xca   : > { %v322_v60 = vpop.xlane.xlu0 %321  ;;  %v359_v61 = vmul.f32 0.00390625, %v337_v59 }
  0xcb   : > { %v354_v62 = vmul.f32 0.00390625, %v322_v60  ;;  %v449_v60 = vperm.slane %v355_v48, %v2598_v16 }
  0xcc   : > { %v456_v49 = vperm.slane %v359_v61, %v2598_v16 }
  0xcd   : > { %v447_v63 = vperm.slane %v354_v62, %v2615_v55  ;;  %v452_v62 = vperm.slane %v357_v56, %v2601_v20  ;;  %v451_v7 = vsel %vm432_vm0, %v450_v58, %v449_v60 }
  0xcf   : > { %v448_v15 = vsel %vm440_vm2, %v447_v63, %v446_v3  ;;  %v453_v57 = vsel %vm436_vm1, %v452_v62, %v451_v7 }
  0xd0   : > { %v2624_v17 = vsel %vm463_vm3, %v448_v15, %v441_v8  ;;  %v365_v21 = vpop.xlane.xlu1 %364 }
  0xd1   : > { %v368_v25 = vpop.xlane.xlu2 %367  ;;  %v486_v3 = vperm.slane %v365_v21, %v2598_v16 }
  0xd2   : > { %v340_v26 = vpop.xlane.xlu0 %339  ;;  %v487_v63 = vperm.slane %v368_v25, %v2604_v24 }
  0xd3   : > { %v360_v8 = vmul.f32 0.00390625, %v340_v26 }
  0xd4   : > { %v488_v45 = vsel %vm432_vm0, %v487_v63, %v486_v3 }
  0xd5   : > { %v457_v59 = vperm.slane %v360_v8, %v2604_v24 }
  0xd8   : > { %v380_v33 = vpop.xlane.xlu1 %379 }
  0xd9   : > { %v334_v34 = vpop.xlane.xlu2 %333  ;;  %v494_v25 = vperm.slane %v380_v33, %v2604_v24 }
  0xda   : > { %v377_v35 = vpop.xlane.xlu0 %376  ;;  %v358_v52 = vmul.f32 0.00390625, %v334_v34 }
  0xdb   : > { %v493_v21 = vperm.slane %v377_v35, %v2598_v16 }
  0xdc   : > { %v454_v35 = vperm.slane %v358_v52, %v2615_v55 }
  0xe0   : > { %v371_v38 = vpop.xlane.xlu1 %370 }
  0xe1   : > { %v383_v39 = vpop.xlane.xlu2 %382  ;;  %v489_v60 = vperm.slane %v371_v38, %v2601_v20  ;;  %v495_v38 = vsel %vm432_vm0, %v494_v25, %v493_v21 }
  0xe2   : > { %v343_v40 = vpop.xlane.xlu0 %342  ;;  %v496_v58 = vperm.slane %v383_v39, %v2601_v20 }
  0xe3   : > { %v361_v48 = vmul.f32 0.00390625, %v343_v40 }
  0xe4   : > { %v497_v62 = vsel %vm436_vm1, %v496_v58, %v495_v38 }
  0xe8   : > { %v392_v41 = vpop.xlane.xlu1 %391 }
  0xe9   : > { %v346_v42 = vpop.xlane.xlu2 %345  ;;  %v501_v7 = vperm.slane %v392_v41, %v2604_v24 }
  0xea   : > { %v389_v43 = vpop.xlane.xlu0 %388  ;;  %v362_v26 = vmul.f32 0.00390625, %v346_v42  ;;  %v459_v42 = vperm.slane %v361_v48, %v2601_v20 }
  0xeb   : > { %v500_v61 = vperm.slane %v389_v43, %v2598_v16 }
  0xec   : > { %v461_v41 = vperm.slane %v362_v26, %v2615_v55 }
  0xed   : > { %v502_v52 = vsel %vm432_vm0, %v501_v7, %v500_v61 }
  0xf0   : > { %v386_v44 = vpop.xlane.xlu1 %385 }
  0xf1   : > { %v395_v50 = vpop.xlane.xlu2 %394  ;;  %v498_v40 = vperm.slane %v386_v44, %v2615_v55  ;;  %v458_v44 = vsel %vm432_vm0, %v457_v59, %v456_v49 }
  0xf2   : > { %v374_v54 = vpop.xlane.xlu0 %373  ;;  %v503_v34 = vperm.slane %v395_v50, %v2601_v20  ;;  %v460_v49 = vsel %vm436_vm1, %v459_v42, %v458_v44 }
  0xf3   : > { %v491_v33 = vperm.slane %v374_v54, %v2615_v55  ;;  %v490_v54 = vsel %vm436_vm1, %v489_v60, %v488_v45  ;;  %v499_v8 = vsel %vm440_vm2, %v498_v40, %v497_v62  ;;  %v462_v59 = vsel %vm440_vm2, %v461_v41, %v460_v49 }
  0xf4   : > { %v504_v3 = vsel %vm436_vm1, %v503_v34, %v502_v52  ;;  %v3078_v52 = vlaneseq }
  0xf5   : > { %v492_v48 = vsel %vm440_vm2, %v491_v33, %v490_v54 }
  0xf6   : > { %v515_v26 = vsel %vm514_vm6, %v499_v8, %v492_v48  ;;  %v524_v8 = vld [vmem:[#allocation7] sm:$0x3] }
  0xf7   : > { %v559_v48 = vperm.slane %v524_v8, 1 }
  0xf8   : > { %v404_v15 = vpop.xlane.xlu1 %403 }
  0xf9   : > { %v398_v56 = vpop.xlane.xlu2 %397  ;;  %v508_v43 = vperm.slane %v404_v15, %v2604_v24  ;;  %v523_v15 = vld [vmem:[#allocation5] sm:$0x3] }
  0xfa   : > { %v401_v53 = vpop.xlane.xlu0 %400  ;;  %v505_v39 = vperm.slane %v398_v56, %v2615_v55  ;;  %v525_v58 = vperm.slane %v523_v15, 0 }
  0xfb   : > { %v507_v50 = vperm.slane %v401_v53, %v2598_v16  ;;  %v455_v16 = vsel %vm440_vm2, %v454_v35, %v453_v57 }
  0xfc   : > { %v506_v53 = vsel %vm440_vm2, %v505_v39, %v504_v3  ;;  %v466_v7 = vsel %vm465_vm4, %v455_v16, %v2624_v17  ;;  %v2294_v39 = vmov 0  }
  0xfd   : > { %v509_v21 = vsel %vm432_vm0, %v508_v43, %v507_v50  ;;  %v517_v57 = vsel %vm516_vm7, %v506_v53, %v515_v26  ;;  %2063 = vset.pattern.permute.xlu2 %v2294_v39  ;;  %2062 = vset.pattern.permute.xlu1 %v2294_v39 }
 0x100   : > { %v410_v63 = vpop.xlane.xlu1 %409 }
 0x101   : > { %v512_v24 = vperm.slane %v410_v63, %v2615_v55  ;;  %v544_v55 = vperm.slane %v523_v15, 1  ;;  %v583_v63 = vshrl.u32 %v3078_v52, 7  ;;  %v1832_v52 = vld [vmem:[#allocation8 + $0x170] sm:$0xf] }
 0x102   : > { %v407_v25 = vpop.xlane.xlu0 %406 }
 0x103   : > { %v510_v45 = vperm.slane %v407_v25, %v2601_v20  ;;  %v468_v20 = vsel %vm467_vm5, %v462_v59, %v466_v7  ;;  %2064 = vset.pattern.permute.xlu0 %v583_v63  ;;  %v590_v3 = vadd.s32 8, %v583_v63  ;;  %v541_v25 = vperm.slane %v524_v8, 0  ;;  %v1975_v8 = vld [vmem:[#allocation8 + $0x1f4] sm:$0xf0] }
 0x104   : > { %v602_v39 = vadd.s32 24, %v583_v63 }
 0x105   : > { %v511_v56 = vsel %vm436_vm1, %v510_v45, %v509_v21 }
 0x106   : > { %v513_v60 = vsel %vm440_vm2, %v512_v24, %v511_v56 }
 0x107   : > { %v519_v61 = vsel %vm518_vm8, %v513_v60, %v517_v57 }
 0x108   : > { %v522_v34 = vsel %vm521_vm9, %v468_v20, %v519_v61  ;;  %vm1422_vm9 = vcmask 1040384  }
 0x109   : > { %v545_v40 = vmul.f32 %v544_v55, %v522_v34  ;;  %v526_v33 = vmul.f32 %v525_v58, %v522_v34 }
 0x10b   : > { %v546_v35 = vsel %vm527_vm10, %v545_v40, 0.0  ;;  %v528_v42 = vsel %vm527_vm10, %v526_v33, 0.0 }
 0x10c   : > { %547 = vadd.xlane.f32.xlu0 %v546_v35  ;;  %529 = vadd.xlane.f32.xlu2 %v528_v42  ;;  %v596_v35 = vadd.s32 16, %v583_v63 }
 0x17f   : > { %v548_v38 = vpop.xlane.xlu0 %547  ;;  %v530_v41 = vpop.xlane.xlu2 %529 }
 0x180   : > { %v549_v43 = vmax.f32 %v548_v38, 0.0  ;;  %v531_v50 = vmax.f32 %v530_v41, 0.0 }
 0x182   : > { %v551_v44 = vrot.slane %v549_v43, 4  ;;  %v533_v17 = vrot.slane %v531_v50, 4 }
 0x184   : > { %v553_v62 = vadd.f32 %v551_v44, %v549_v43  ;;  %v535_v54 = vadd.f32 %v533_v17, %v531_v50  ;;  %v1704_v50 = vld [vmem:[#allocation8 + $0x70] sm:$0xf]  ;;  %v1927_v44 = vld [vmem:[#allocation8 + $0x74] sm:$0xf0] }
 0x185   : > { %v1768_v17 = vld [vmem:[#allocation8 + $0xf0] sm:$0xf] }
 0x186   : > { %556 = vperm.xlu2 %2063, %v553_v62   ;;  %538 = vperm.xlu1 %2062, %v535_v54   ;;  %v1705_v62 = vor.u32 %v1927_v44, %v1704_v50  ;;  %v1943_v54 = vld [vmem:[#allocation8 + $0xf4] sm:$0xf0]  ;;  %v1880_v44 = vld [vmem:[#allocation8 + $0x1d0] sm:$0xf] }
 0x188   : > { %1277 = vmatpush.bf16.msra.mxu0 %v1705_v62 }
 0x18e   : > { %2066 = vset.pattern.permute.xlu1 %v583_v63  ;;  %2065 = vset.pattern.permute.xlu2 %v590_v3 }
 0x1e0   : > { %v557_v24 = vpop.permute.xlu2 %556 }
 0x1e1   : > { %v560_v16 = vmul.f32 %v559_v48, %v557_v24 }
 0x1f8   : > { %v539_v15 = vpop.permute.xlu1 %538 }
 0x1f9   : > { %v542_v49 = vmul.f32 %v541_v25, %v539_v15  ;;  %v1769_v25 = vor.u32 %v1943_v54, %v1768_v17  ;;  %v1971_v17 = vld [vmem:[#allocation8 + $0x1d4] sm:$0xf0]  ;;  %v1680_v54 = vld [vmem:[#allocation8 + $0x40] sm:$0xf] }
 0x1fa   : > { %v1881_v62 = vor.u32 %v1971_v17, %v1880_v44  ;;  %v1728_v44 = vld [vmem:[#allocation8 + $0xa0] sm:$0xf] }
 0x1fb   : > { %v561_v53 = vadd.f32 %v560_v16, %v542_v49  ;;  %v1696_v16 = vld [vmem:[#allocation8 + $0x60] sm:$0xf]  ;;  %v1925_v49 = vld [vmem:[#allocation8 + $0x64] sm:$0xf0]  ;;  %1290 = vmatpush.bf16.msra.mxu1 %v1769_v25 }
 0x1fc   : > { %v1808_v25 = vld [vmem:[#allocation8 + $0x140] sm:$0xf] }
 0x1fd   : > { %v1645_v45 = vmul.f32 -1.442695, %v561_v53  ;;  %v1760_v53 = vld [vmem:[#allocation8 + $0xe0] sm:$0xf] }
 0x1ff   : > { %2075 = vpow2.f32 %v1645_v45  ;;  %v1697_v45 = vor.u32 %v1925_v49, %v1696_v16 }
 0x201   : > { %1278 = vmatpush.bf16.msra.mxu0 %v1697_v45  ;;  %v1969_v45 = vld [vmem:[#allocation8 + $0x1c4] sm:$0xf0] }
 0x205   : > { %v2076_v59 = vpop.eup %2075 }
 0x206   : > { %v565_v21 = vadd.f32 1.0, %v2076_v59  ;;  %v1941_v59 = vld [vmem:[#allocation8 + $0xe4] sm:$0xf0] }
 0x208   : > { %2077 = vrcp.f32 %v565_v21  ;;  %v577_v58 = vand.u32 2147483648, %v565_v21  ;;  %v575_v60 = vand.u32 2147483647, %v565_v21  ;;  %vm571_vm12 = vweird.f32 %v565_v21 }
 0x20a   : > { %v578_v20 = vor.u32 1.1754944e-38, %v577_v58  ;;  %vm576_vm14 = vcmp.eq.f32.partialorder %v575_v60, 8.507059e+37  ;;  %v1888_v58 = vld [vmem:[#allocation8 + $0x1e0] sm:$0xf] }
 0x20e   : > { %v2078_v26 = vpop.eup %2077 }
 0x20f   : > { %v567_v56 = vmul.f32 %v2078_v26, %v565_v21  ;;  %vm572_vm11 = vweird.f32 %v2078_v26  ;;  %v1824_v21 = vld [vmem:[#allocation8 + $0x160] sm:$0xf] }
 0x210   : > { %vm573_vm13 = vmor %vm571_vm12, %vm572_vm11 }
 0x211   : > { %v568_v55 = vsub.f32 1.0, %v567_v56  ;;  %v1761_v56 = vor.u32 %v1941_v59, %v1760_v53  ;;  %v1872_v53 = vld [vmem:[#allocation8 + $0x1c0] sm:$0xf] }
 0x213   : > { %v569_v57 = vmul.f32 %v2078_v26, %v568_v55  ;;  %1291 = vmatpush.bf16.msra.mxu1 %v1761_v56 }
 0x215   : > { %v570_v7 = vadd.f32 %v2078_v26, %v569_v57  ;;  %v1973_v57 = vld [vmem:[#allocation8 + $0x1e4] sm:$0xf0] }
 0x217   : > { %v574_v61 = vsel %vm573_vm13, %v2078_v26, %v570_v7  ;;  %v1957_v26 = vld [vmem:[#allocation8 + $0x164] sm:$0xf0]  ;;  %v1889_v7 = vor.u32 %v1973_v57, %v1888_v58  ;;  %v1672_v58 = vld [vmem:[#allocation8 + $0x30] sm:$0xf]  ;;  %v1919_v57 = vld [vmem:[#allocation8 + $0x34] sm:$0xf0] }
 0x218   : > { %v579_v34 = vsel %vm576_vm14, %v578_v20, %v574_v61  ;;  %v1825_v55 = vor.u32 %v1957_v26, %v1824_v21  ;;  %v1688_v20 = vld [vmem:[#allocation8 + $0x50] sm:$0xf]  ;;  %v1923_v61 = vld [vmem:[#allocation8 + $0x54] sm:$0xf0]  ;;  %v1873_v26 = vor.u32 %v1969_v45, %v1872_v53 }
 0x219   : > { %v606_v40 = vperm.slane %v579_v34, 1  ;;  %v581_v33 = vperm.slane %v579_v34, 0  ;;  %v631_v42 = vperm.slane %v579_v34, 2  ;;  %v656_v38 = vperm.slane %v579_v34, 3  ;;  %v1752_v34 = vld [vmem:[#allocation8 + $0xd0] sm:$0xf] }
 0x21b   : > { %611 = vperm.xlu1 %2066, %v606_v40   ;;  %592 = vperm.xlu2 %2065, %v581_v33  }
 0x21c   : > { %586 = vperm.xlu0 %2064, %v581_v33  }
 0x223   : > { %636 = vperm.xlu1 %2066, %v631_v42   ;;  %617 = vperm.xlu2 %2065, %v606_v40  }
 0x224   : > { %2068 = vset.pattern.permute.xlu0 %v596_v35 }
 0x22b   : > { %2067 = vset.pattern.permute.xlu1 %v596_v35  ;;  %642 = vperm.xlu2 %2065, %v631_v42  }
 0x22c   : > { %623 = vperm.xlu0 %2068, %v606_v40  }
 0x233   : > { %598 = vperm.xlu1 %2067, %v581_v33   ;;  %2069 = vset.pattern.permute.xlu2 %v583_v63  ;;  %v1959_v63 = vld [vmem:[#allocation8 + $0x174] sm:$0xf0] }
 0x234   : > { %2073 = vset.pattern.permute.xlu0 %v602_v39  ;;  %v1833_v24 = vor.u32 %v1959_v63, %v1832_v52  ;;  %v1921_v52 = vld [vmem:[#allocation8 + $0x44] sm:$0xf0]  ;;  %v1744_v63 = vld [vmem:[#allocation8 + $0xc0] sm:$0xf] }
 0x236   : > { %1303 = vmatpush.bf16.msra.mxu2 %v1833_v24  ;;  %v1953_v24 = vld [vmem:[#allocation8 + $0x144] sm:$0xf0] }
 0x237   : > { %v1809_v49 = vor.u32 %v1953_v24, %v1808_v25 }
 0x23a   : > { %1304 = vmatpush.bf16.msra.mxu2 %v1825_v55 }
 0x23b   : > { %2070 = vset.pattern.permute.xlu1 %v590_v3  ;;  %661 = vperm.xlu2 %2069, %v656_v38   ;;  %v1896_v3 = vld [vmem:[#allocation8 + $0x1f0] sm:$0xf] }
 0x23c   : > { %629 = vperm.xlu0 %2073, %v606_v40   ;;  %v1897_v15 = vor.u32 %v1975_v8, %v1896_v3  ;;  %v1689_v40 = vor.u32 %v1923_v61, %v1688_v20  ;;  %v1937_v8 = vld [vmem:[#allocation8 + $0xc4] sm:$0xf0] }
 0x23d   : > { %v1745_v16 = vor.u32 %v1937_v8, %v1744_v63  ;;  %v1792_v63 = vld [vmem:[#allocation8 + $0x120] sm:$0xf] }
 0x23e   : > { %1316 = vmatpush.bf16.msra.mxu3 %v1897_v15  ;;  %1279 = vmatpush.bf16.msra.mxu0 %v1689_v40  ;;  %v1681_v15 = vor.u32 %v1921_v52, %v1680_v54 }
 0x242   : > { %1317 = vmatpush.bf16.msra.mxu3 %v1889_v7  ;;  %1280 = vmatpush.bf16.msra.mxu0 %v1681_v15  ;;  %v1736_v7 = vld [vmem:[#allocation8 + $0xb0] sm:$0xf] }
 0x243   : > { %667 = vperm.xlu1 %2070, %v656_v38   ;;  %2071 = vset.pattern.permute.xlu2 %v596_v35  ;;  %v1816_v35 = vld [vmem:[#allocation8 + $0x150] sm:$0xf] }
 0x246   : > { %1318 = vmatpush.bf16.msra.mxu3 %v1881_v62 }
 0x24a   : > { %1319 = vmatpush.bf16.msra.mxu3 %v1873_v26 }
 0x24b   : > { %2072 = vset.pattern.permute.xlu1 %v602_v39  ;;  %648 = vperm.xlu2 %2071, %v631_v42  }
 0x253   : > { %604 = vperm.xlu1 %2072, %v581_v33   ;;  %673 = vperm.xlu2 %2071, %v656_v38   ;;  %v1939_v33 = vld [vmem:[#allocation8 + $0xd4] sm:$0xf0] }
 0x25b   : > { %654 = vperm.xlu1 %2072, %v631_v42   ;;  %2074 = vset.pattern.permute.xlu2 %v602_v39  ;;  %v1955_v42 = vld [vmem:[#allocation8 + $0x154] sm:$0xf0] }
 0x25c   : > { %v1817_v50 = vor.u32 %v1955_v42, %v1816_v35  ;;  %v1967_v35 = vld [vmem:[#allocation8 + $0x1b4] sm:$0xf0] }
 0x25e   : > { %1305 = vmatpush.bf16.msra.mxu2 %v1817_v50  ;;  %v1917_v50 = vld [vmem:[#allocation8 + $0x24] sm:$0xf0] }
 0x262   : > { %1306 = vmatpush.bf16.msra.mxu2 %v1809_v49  ;;  %v1965_v49 = vld [vmem:[#allocation8 + $0x1a4] sm:$0xf0] }
 0x263   : > { %679 = vperm.xlu2 %2074, %v656_v38   ;;  %v1753_v38 = vor.u32 %v1939_v33, %v1752_v34  ;;  %v1935_v34 = vld [vmem:[#allocation8 + $0xb4] sm:$0xf0] }
 0x265   : > { %1292 = vmatpush.bf16.msra.mxu1 %v1753_v38  ;;  %v1737_v38 = vor.u32 %v1935_v34, %v1736_v7  ;;  %v1915_v34 = vld [vmem:[#allocation8 + $0x14] sm:$0xf0] }
 0x269   : > { %1293 = vmatpush.bf16.msra.mxu1 %v1745_v16  ;;  %v1856_v16 = vld [vmem:[#allocation8 + $0x1a0] sm:$0xf] }
 0x26a   : > { %v1857_v26 = vor.u32 %v1965_v49, %v1856_v16 }
 0x26d   : > { %1294 = vmatpush.bf16.msra.mxu1 %v1737_v38  ;;  %v1931_v38 = vld [vmem:[#allocation8 + $0x94] sm:$0xf0] }
 0x275   : > { %v2674_v41 = vpop.permute.xlu2 %592 }
 0x276   : > { %v2683_v56 = vmul.f32 %v2674_v41, %v2490_v13  ;;  %v2690_v20 = vmul.f32 %v2674_v41, %v2493_v14  ;;  %v1673_v13 = vor.u32 %v1919_v57, %v1672_v58  ;;  %v1864_v41 = vld [vmem:[#allocation8 + $0x1b0] sm:$0xf] }
 0x278   : > { %1281 = vmatpush.bf16.msra.mxu0 %v1673_v13 }
 0x27d   : > { %v2676_v43 = vpop.permute.xlu2 %617 }
 0x27e   : > { %v2701_v40 = vmul.f32 %v2676_v43, %v2481_v10 }
 0x285   : > { %v643_v60 = vpop.permute.xlu2 %642 }
 0x286   : > { %v2704_v33 = vmul.f32 %v643_v60, %v2502_v18  ;;  %v2707_v14 = vmul.f32 %v643_v60, %v2505_v19 }
 0x288   : > { %3079 = vst [vmem:[#allocation16_spill] sm:$0xff] %v2704_v33 }
 0x289   : > { %3080 = vst [vmem:[#allocation17_spill] sm:$0xff] %v2707_v14 }
 0x28d   : > { %v612_v48 = vpop.permute.xlu1 %611 }
 0x28e   : > { %v587_v39 = vpop.permute.xlu0 %586  ;;  %v2679_v59 = vmul.f32 %v612_v48, %v2454_v0  ;;  %v2686_v55 = vmul.f32 %v612_v48, %v2457_v1  ;;  %v2694_v0 = vmul.f32 %v2676_v43, %v2478_v9  ;;  %v1800_v1 = vld [vmem:[#allocation8 + $0x130] sm:$0xf]  ;;  %v1951_v48 = vld [vmem:[#allocation8 + $0x134] sm:$0xf0]  ;;  %v1865_v43 = vor.u32 %v1967_v35, %v1864_v41 }
 0x28f   : > { %v2697_v61 = vmul.f32 %v587_v39, %v2468_v5  ;;  %v2710_v9 = vmul.f32 %v587_v39, %v2471_v6  ;;  %v1801_v10 = vor.u32 %v1951_v48, %v1800_v1  ;;  %v1664_v39 = vld [vmem:[#allocation8 + $0x20] sm:$0xf]  ;;  %v1720_v1 = vld [vmem:[#allocation8 + $0x90] sm:$0xf] }
 0x290   : > { %v731_v42 = vadd.f32 %v2694_v0, %v2679_v59  ;;  %v740_v18 = vadd.f32 %v2701_v40, %v2686_v55  ;;  %v803_v19 = vmax.f32 %v2679_v59, %v2694_v0  ;;  %v812_v17 = vmax.f32 %v2686_v55, %v2701_v40  ;;  %1320 = vmatpush.bf16.msra.mxu3 %v1865_v43 }
 0x291   : > { %v713_v62 = vadd.f32 %v2683_v56, %v2697_v61  ;;  %v722_v8 = vadd.f32 %v2690_v20, %v2710_v9  ;;  %1307 = vmatpush.bf16.msra.mxu2 %v1801_v10  ;;  %v1665_v25 = vor.u32 %v1917_v50, %v1664_v39  ;;  %v1784_v10 = vld [vmem:[#allocation8 + $0x110] sm:$0xf]  ;;  %v1721_v39 = vor.u32 %v1931_v38, %v1720_v1  ;;  %v1840_v1 = vld [vmem:[#allocation8 + $0x180] sm:$0xf] }
 0x293   : > { %1282 = vmatpush.bf16.msra.mxu0 %v1665_v25 }
 0x294   : > { %1321 = vmatpush.bf16.msra.mxu3 %v1857_v26  ;;  %v1776_v26 = vld [vmem:[#allocation8 + $0x100] sm:$0xf] }
 0x295   : > { %v637_v3 = vpop.permute.xlu1 %636  ;;  %v662_v21 = vpop.permute.xlu2 %661 }
 0x296   : > { %v2719_v6 = vmul.f32 %v637_v3, %v2510_v22  ;;  %v2722_v60 = vmul.f32 %v637_v3, %v2513_v23  ;;  %v1933_v23 = vld [vmem:[#allocation8 + $0xa4] sm:$0xf0]  ;;  %v2741_v53 = vmul.f32 %v662_v21, %v2526_v29  ;;  %v2752_v7 = vmul.f32 %v662_v21, %v2529_v30  ;;  %v1656_v29 = vld [vmem:[#allocation8 + $0x10] sm:$0xf]  ;;  %v1947_v30 = vld [vmem:[#allocation8 + $0x114] sm:$0xf0] }
 0x297   : > { %v1949_v3 = vld [vmem:[#allocation8 + $0x124] sm:$0xf0]  ;;  %v1729_v24 = vor.u32 %v1933_v23, %v1728_v44  ;;  %v1657_v35 = vor.u32 %v1915_v34, %v1656_v29  ;;  %v1785_v50 = vor.u32 %v1947_v30, %v1784_v10  ;;  %v1848_v44 = vld [vmem:[#allocation8 + $0x190] sm:$0xf]  ;;  %v1963_v23 = vld [vmem:[#allocation8 + $0x194] sm:$0xf0] }
 0x298   : > { %3081 = vst [vmem:[#allocation18_spill] sm:$0xff] %v2719_v6  ;;  %v1793_v15 = vor.u32 %v1949_v3, %v1792_v63  ;;  %v2745_v58 = vadd.f32 %v2704_v33, %v2719_v6  ;;  %v2749_v57 = vadd.f32 %v2707_v14, %v2722_v60  ;;  %v821_v48 = vmax.f32 %v2719_v6, %v2704_v33  ;;  %v2859_v6 = vld [vmem:[#allocation8 + $0x44] sm:$0xf] }
 0x299   : > { %3082 = vst [vmem:[#allocation19_spill] sm:$0xff] %v2722_v60  ;;  %1295 = vmatpush.bf16.msra.mxu1 %v1729_v24  ;;  %v1849_v3 = vor.u32 %v1963_v23, %v1848_v44  ;;  %1283 = vmatpush.bf16.msra.mxu0 %v1657_v35  ;;  %v1712_v24 = vld [vmem:[#allocation8 + $0x80] sm:$0xf]  ;;  %v1961_v35 = vld [vmem:[#allocation8 + $0x184] sm:$0xf0] }
 0x29a   : > { %3083 = vst [vmem:[#allocation20_spill] sm:$0xff] %v2741_v53  ;;  %1308 = vmatpush.bf16.msra.mxu2 %v1793_v15  ;;  %v1942_v44 = vld [vmem:[#allocation8 + $0xf4] sm:$0xf]  ;;  %v1770_v23 = vld [vmem:[#allocation8 + $0xf8] sm:$0xf0] }
 0x29b   : > { %3084 = vst [vmem:[#allocation21_spill] sm:$0xff] %v2752_v7  ;;  %1322 = vmatpush.bf16.msra.mxu3 %v1849_v3 }
 0x29d   : > { %1296 = vmatpush.bf16.msra.mxu1 %v1721_v39  ;;  %v1841_v39 = vor.u32 %v1961_v35, %v1840_v1 }
 0x29e   : > { %v624_v5 = vpop.permute.xlu0 %623  ;;  %1309 = vmatpush.bf16.msra.mxu2 %v1785_v50 }
 0x29f   : > { %v2729_v54 = vmul.f32 %v624_v5, %v2484_v11  ;;  %v2732_v52 = vmul.f32 %v624_v5, %v2487_v12  ;;  %v785_v11 = vmax.f32 %v2697_v61, %v2683_v56  ;;  %v794_v12 = vmax.f32 %v2710_v9, %v2690_v20  ;;  %1323 = vmatpush.bf16.msra.mxu3 %v1841_v39  ;;  %v1826_v39 = vld [vmem:[#allocation8 + $0x168] sm:$0xf0] }
 0x2a1   : > { %v732_v5 = vadd.f32 %v731_v42, %v2729_v54  ;;  %v741_v41 = vadd.f32 %v740_v18, %v2732_v52  ;;  %v804_v21 = vmax.f32 %v803_v19, %v2729_v54  ;;  %v813_v42 = vmax.f32 %v812_v17, %v2732_v52  ;;  %v1913_v17 = vld [vmem:[#allocation8 + $0x4] sm:$0xf0] }
 0x2a5   : > { %v599_v22 = vpop.permute.xlu1 %598  ;;  %v649_v45 = vpop.permute.xlu2 %648 }
 0x2a6   : > { %v2755_v13 = vmul.f32 %v599_v22, %v2460_v2  ;;  %v2763_v2 = vmul.f32 %v599_v22, %v2465_v4  ;;  %v830_v4 = vmax.f32 %v2722_v60, %v2707_v14  ;;  %v2778_v22 = vmul.f32 %v649_v45, %v2520_v27  ;;  %v1945_v27 = vld [vmem:[#allocation8 + $0x104] sm:$0xf0]  ;;  %v1882_v60 = vld [vmem:[#allocation8 + $0x1d8] sm:$0xf0] }
 0x2a7   : > { %v2781_v25 = vmul.f32 %v649_v45, %v2523_v28  ;;  %v1777_v34 = vor.u32 %v1945_v27, %v1776_v26 }
 0x2a8   : > { %v2775_v19 = vadd.f32 %v713_v62, %v2755_v13  ;;  %3086 = vst [vmem:[#allocation23_spill] sm:$0xff] %v2778_v22  ;;  %v1929_v62 = vld [vmem:[#allocation8 + $0x84] sm:$0xf0]  ;;  %v2788_v29 = vadd.f32 %v722_v8, %v2763_v2  ;;  %v2800_v8 = vmax.f32 %v794_v12, %v2763_v2  ;;  %v1773_v12 = vor.u32 %v1942_v44, %v1770_v23 }
 0x2a9   : > { %3087 = vst [vmem:[#allocation24_spill] sm:$0xff] %v2781_v25  ;;  %v1713_v45 = vor.u32 %v1929_v62, %v1712_v24  ;;  %1310 = vmatpush.bf16.msra.mxu2 %v1777_v34  ;;  %v2839_v44 = vmax.f32 %v830_v4, %v2781_v25 }
 0x2ab   : > { %1297 = vmatpush.bf16.msra.mxu1 %v1713_v45  ;;  %v2810_v45 = vadd.f32 %v2745_v58, %v2778_v22 }
 0x2ae   : > { %v630_v43 = vpop.permute.xlu0 %629 }
 0x2af   : > { %v2767_v18 = vmul.f32 %v630_v43, %v2532_v31  ;;  %v2770_v63 = vmul.f32 %v630_v43, %v2535_v32  ;;  %v1648_v31 = vld [vmem:[#allocation8] sm:$0xf]  ;;  %v2794_v43 = vmax.f32 %v785_v11, %v2755_v13  ;;  %1342 = vmatpush.bf16.msrb.mxu1 %v1773_v12  ;;  %v1890_v12 = vld [vmem:[#allocation8 + $0x1e8] sm:$0xf0] }
 0x2b0   : > { %v1649_v28 = vor.u32 %v1913_v17, %v1648_v31 }
 0x2b1   : > { %3085 = vst [vmem:[#allocation22_spill] sm:$0xff] %v2770_v63  ;;  %v733_v32 = vadd.f32 %v732_v5, %v2767_v18  ;;  %v742_v15 = vadd.f32 %v741_v41, %v2770_v63  ;;  %v805_v16 = vmax.f32 %v804_v21, %v2767_v18  ;;  %v814_v49 = vmax.f32 %v813_v42, %v2770_v63  ;;  %v1926_v5 = vld [vmem:[#allocation8 + $0x74] sm:$0xf]  ;;  %v1706_v21 = vld [vmem:[#allocation8 + $0x78] sm:$0xf0]  ;;  %v674_v42 = vpop.permute.xlu2 %673 }
 0x2b2   : > { %1284 = vmatpush.bf16.msra.mxu0 %v1649_v28  ;;  %v1709_v50 = vor.u32 %v1926_v5, %v1706_v21  ;;  %v1924_v5 = vld [vmem:[#allocation8 + $0x64] sm:$0xf]  ;;  %v2842_v23 = vmul.f32 %v674_v42, %v2565_v47  ;;  %v1778_v63 = vld [vmem:[#allocation8 + $0x108] sm:$0xf0] }
 0x2b3   : > { %v734_v38 = vrot.slane %v733_v32, 4  ;;  %v743_v41 = vrot.slane %v742_v15, 4  ;;  %v806_v10 = vrot.slane %v805_v16, 4  ;;  %v815_v30 = vrot.slane %v814_v49, 4  ;;  %v1956_v21 = vld [vmem:[#allocation8 + $0x164] sm:$0xf] }
 0x2b4   : > { %3091 = vst [vmem:[#allocation28_spill] sm:$0xff] %v2842_v23 }
 0x2b5   : > { %v735_v3 = vadd.f32 %v734_v38, %v733_v32  ;;  %v744_v31 = vadd.f32 %v743_v41, %v742_v15  ;;  %v807_v17 = vmax.f32 %v805_v16, %v806_v10  ;;  %v816_v24 = vmax.f32 %v814_v49, %v815_v30  ;;  %v668_v62 = vpop.permute.xlu1 %667  ;;  %v1958_v32 = vld [vmem:[#allocation8 + $0x174] sm:$0xf]  ;;  %v1834_v15 = vld [vmem:[#allocation8 + $0x178] sm:$0xf0]  ;;  %v1698_v38 = vld [vmem:[#allocation8 + $0x68] sm:$0xf0] }
 0x2b6   : > { %v2803_v11 = vmul.f32 %v668_v62, %v2544_v36  ;;  %v2806_v26 = vmul.f32 %v668_v62, %v2547_v37  ;;  %1329 = vmatpush.bf16.msrb.mxu0 %v1709_v50  ;;  %v1974_v16 = vld [vmem:[#allocation8 + $0x1f4] sm:$0xf]  ;;  %v1898_v49 = vld [vmem:[#allocation8 + $0x1f8] sm:$0xf0]  ;;  %v2814_v36 = vadd.f32 %v2749_v57, %v2781_v25  ;;  %v2817_v37 = vmul.f32 %v674_v42, %v2562_v46  ;;  %v1940_v41 = vld [vmem:[#allocation8 + $0xe4] sm:$0xf] }
 0x2b7   : > { %v736_v27 = vrot.slane %v735_v3, 2  ;;  %v745_v28 = vrot.slane %v744_v31, 2  ;;  %v808_v1 = vrot.slane %v807_v17, 2  ;;  %v817_v35 = vrot.slane %v816_v24, 2  ;;  %v1762_v46 = vld [vmem:[#allocation8 + $0xe8] sm:$0xf0] }
 0x2b8   : > { %3088 = vst [vmem:[#allocation25_spill] sm:$0xff] %v2803_v11  ;;  %v767_v34 = vadd.f32 %v2803_v11, %v2741_v53  ;;  %v776_v58 = vadd.f32 %v2806_v26, %v2752_v7  ;;  %v839_v30 = vmax.f32 %v2741_v53, %v2803_v11  ;;  %v848_v57 = vmax.f32 %v2752_v7, %v2806_v26  ;;  %v1972_v62 = vld [vmem:[#allocation8 + $0x1e4] sm:$0xf]  ;;  %v1690_v53 = vld [vmem:[#allocation8 + $0x58] sm:$0xf0] }
 0x2b9   : > { %3089 = vst [vmem:[#allocation26_spill] sm:$0xff] %v2806_v26  ;;  %v2821_v10 = vadd.f32 %v736_v27, %v735_v3  ;;  %v2833_v50 = vmax.f32 %v821_v48, %v2778_v22  ;;  %v2844_v3 = vadd.f32 %v745_v28, %v744_v31  ;;  %v1922_v27 = vld [vmem:[#allocation8 + $0x54] sm:$0xf]  ;;  %v2847_v11 = vmax.f32 %v807_v17, %v808_v1  ;;  %v1754_v42 = vld [vmem:[#allocation8 + $0xd8] sm:$0xf0] }
 0x2ba   : > { %3090 = vst [vmem:[#allocation27_spill] sm:$0xff] %v2817_v37  ;;  %v2849_v48 = vmax.f32 %v816_v24, %v817_v35  ;;  %v768_v7 = vadd.f32 %v767_v34, %v2817_v37  ;;  %v1938_v22 = vld [vmem:[#allocation8 + $0xd4] sm:$0xf]  ;;  %v1837_v4 = vor.u32 %v1958_v32, %v1834_v15  ;;  %v1901_v25 = vor.u32 %v1974_v16, %v1898_v49  ;;  %v2854_v28 = vld [vmem:[#allocation8 + $0x158] sm:$0xf0]  ;;  %v3093_v15 = vld [vmem:[#allocation15_spill] sm:$0xff] }
 0x2bb   : > { %v738_v26 = vrot.slane %v2821_v10, 1  ;;  %v1701_v14 = vor.u32 %v1924_v5, %v1698_v38  ;;  %v1765_v47 = vor.u32 %v1940_v41, %v1762_v46  ;;  %v2852_v31 = vld [vmem:[#allocation8 + $0x154] sm:$0xf]  ;;  %v777_v33 = vadd.f32 %v776_v58, %v2842_v23  ;;  %v1682_v5 = vld [vmem:[#allocation8 + $0x48] sm:$0xf0] }
 0x2bc   : > { %v840_v17 = vmax.f32 %v839_v30, %v2817_v37  ;;  %v849_v24 = vmax.f32 %v848_v57, %v2842_v23  ;;  %v1829_v35 = vor.u32 %v1956_v21, %v1826_v39  ;;  %v1970_v34 = vld [vmem:[#allocation8 + $0x1d4] sm:$0xf]  ;;  %1355 = vmatpush.bf16.msrb.mxu2 %v1837_v4  ;;  %1368 = vmatpush.bf16.msrb.mxu3 %v1901_v25  ;;  %v1936_v38 = vld [vmem:[#allocation8 + $0xc4] sm:$0xf]  ;;  %v1746_v41 = vld [vmem:[#allocation8 + $0xc8] sm:$0xf0] }
 0x2bd   : > { %v680_v1 = vpop.permute.xlu2 %679  ;;  %v1893_v49 = vor.u32 %v1972_v62, %v1890_v12  ;;  %v747_v58 = vrot.slane %v2844_v3, 1  ;;  %v810_v30 = vrot.slane %v2847_v11, 1  ;;  %1330 = vmatpush.bf16.msrb.mxu0 %v1701_v14  ;;  %1343 = vmatpush.bf16.msrb.mxu1 %v1765_v47  ;;  %v1693_v57 = vor.u32 %v1922_v27, %v1690_v53  ;;  %v1952_v21 = vld [vmem:[#allocation8 + $0x144] sm:$0xf]  ;;  %v1810_v62 = vld [vmem:[#allocation8 + $0x148] sm:$0xf0] }
 0x2be   : > { %v2862_v32 = vmul.f32 %v680_v1, %v2574_v51  ;;  %v2865_v16 = vmul.f32 %v680_v1, %v3093_v15  ;;  %v1757_v46 = vor.u32 %v1938_v22, %v1754_v42  ;;  %v1968_v12 = vld [vmem:[#allocation8 + $0x1c4] sm:$0xf]  ;;  %v1874_v1 = vld [vmem:[#allocation8 + $0x1c8] sm:$0xf0]  ;;  %v1821_v15 = vor.u32 %v2852_v31, %v2854_v28  ;;  %v1934_v31 = vld [vmem:[#allocation8 + $0xb4] sm:$0xf] }
 0x2bf   : > { %v1885_v23 = vor.u32 %v1970_v34, %v1882_v60  ;;  %v1685_v14 = vor.u32 %v2859_v6, %v1682_v5  ;;  %v1749_v53 = vor.u32 %v1936_v38, %v1746_v41  ;;  %v1877_v42 = vor.u32 %v1968_v12, %v1874_v1  ;;  %v1738_v5 = vld [vmem:[#allocation8 + $0xb8] sm:$0xf0]  ;;  %v1950_v38 = vld [vmem:[#allocation8 + $0x134] sm:$0xf]  ;;  %v2087_v12 = vld [vmem:[%s2439_s20 + $0x30] sm:$0xff] }
 0x2c0   : > { %3092 = vst [vmem:[#allocation29_spill] sm:$0xff] %v2862_v32  ;;  %v769_v51 = vadd.f32 %v768_v7, %v2862_v32  ;;  %v778_v39 = vadd.f32 %v777_v33, %v2865_v16  ;;  %v841_v4 = vmax.f32 %v840_v17, %v2862_v32  ;;  %v850_v25 = vmax.f32 %v849_v24, %v2865_v16  ;;  %v1918_v24 = vld [vmem:[#allocation8 + $0x34] sm:$0xf]  ;;  %v1802_v41 = vld [vmem:[#allocation8 + $0x138] sm:$0xf0] }
 0x2c1   : > { %3094 = vst [vmem:[#allocation15_spill] sm:$0xff] %v2865_v16  ;;  %1356 = vmatpush.bf16.msrb.mxu2 %v1829_v35  ;;  %1369 = vmatpush.bf16.msrb.mxu3 %v1893_v49  ;;  %v1813_v33 = vor.u32 %v1952_v21, %v1810_v62  ;;  %v2877_v17 = vadd.f32 %v738_v26, %v2821_v10  ;;  %v1674_v16 = vld [vmem:[#allocation8 + $0x38] sm:$0xf0]  ;;  %v819_v62 = vrot.slane %v2849_v48, 1 }
 0x2c2   : > { %v770_v22 = vrot.slane %v769_v51, 4  ;;  %v779_v27 = vrot.slane %v778_v39, 4  ;;  %v842_v47 = vrot.slane %v841_v4, 4  ;;  %v851_v7 = vrot.slane %v850_v25, 4  ;;  %1331 = vmatpush.bf16.msrb.mxu0 %v1693_v57  ;;  %1344 = vmatpush.bf16.msrb.mxu1 %v1757_v46  ;;  %v1966_v46 = vld [vmem:[#allocation8 + $0x1b4] sm:$0xf] }
 0x2c3   : > { %v2880_v49 = vadd.f32 %v747_v58, %v2844_v3  ;;  %v2883_v57 = vmax.f32 %v2847_v11, %v810_v30  ;;  %v1677_v26 = vor.u32 %v1918_v24, %v1674_v16  ;;  %v1741_v10 = vor.u32 %v1934_v31, %v1738_v5  ;;  %v1866_v21 = vld [vmem:[#allocation8 + $0x1b8] sm:$0xf0]  ;;  %v2088_v3 = vld [vmem:[%s2439_s20 + $0x38] sm:$0xff] }
 0x2c4   : > { %v771_v60 = vadd.f32 %v770_v22, %v769_v51  ;;  %v780_v28 = vadd.f32 %v779_v27, %v778_v39  ;;  %v843_v6 = vmax.f32 %v841_v4, %v842_v47  ;;  %v852_v34 = vmax.f32 %v850_v25, %v851_v7 }
 0x2c5   : > { %v605_v35 = vpop.permute.xlu1 %604  ;;  %1357 = vmatpush.bf16.msrb.mxu2 %v1821_v15  ;;  %1370 = vmatpush.bf16.msrb.mxu3 %v1885_v23  ;;  %v1805_v11 = vor.u32 %v1950_v38, %v1802_v41  ;;  %v1869_v27 = vor.u32 %v1966_v46, %v1866_v21  ;;  %v2089_v21 = vld [vmem:[%s2439_s20 + $0xb0] sm:$0xff] }
 0x2c6   : > { %v772_v51 = vrot.slane %v771_v60, 2  ;;  %v781_v39 = vrot.slane %v780_v28, 2  ;;  %v844_v4 = vrot.slane %v843_v6, 2  ;;  %v853_v25 = vrot.slane %v852_v34, 2  ;;  %1332 = vmatpush.bf16.msrb.mxu0 %v1685_v14  ;;  %1345 = vmatpush.bf16.msrb.mxu1 %v1749_v53 }
 0x2c7   : > { %v2887_v1 = vmul.f32 %v2087_v12, %v605_v35  ;;  %v2890_v58 = vmul.f32 %v2088_v3, %v605_v35 }
 0x2c8   : > { %v773_v16 = vadd.f32 %v772_v51, %v771_v60  ;;  %v782_v30 = vadd.f32 %v781_v39, %v780_v28  ;;  %v845_v22 = vmax.f32 %v843_v6, %v844_v4  ;;  %v854_v31 = vmax.f32 %v852_v34, %v853_v25  ;;  %v1916_v60 = vld [vmem:[#allocation8 + $0x24] sm:$0xf] }
 0x2c9   : > { %v715_v47 = vadd.f32 %v2775_v19, %v2887_v1  ;;  %v724_v23 = vadd.f32 %v2788_v29, %v2890_v58  ;;  %v787_v15 = vmax.f32 %v2794_v43, %v2887_v1  ;;  %v796_v7 = vmax.f32 %v2800_v8, %v2890_v58  ;;  %1358 = vmatpush.bf16.msrb.mxu2 %v1813_v33  ;;  %v1666_v29 = vld [vmem:[#allocation8 + $0x28] sm:$0xf0] }
 0x2ca   : > { %1371 = vmatpush.bf16.msrb.mxu3 %v1877_v42  ;;  %v774_v14 = vrot.slane %v773_v16, 1  ;;  %v783_v53 = vrot.slane %v782_v30, 1  ;;  %v846_v24 = vrot.slane %v845_v22, 1  ;;  %1333 = vmatpush.bf16.msrb.mxu0 %v1677_v26  ;;  %v2907_v33 = vmax.f32 %v2849_v48, %v819_v62  ;;  %v2090_v26 = vld [vmem:[%s2439_s20 + $0xb8] sm:$0xff] }
 0x2cb   : > { %v716_v28 = vrot.slane %v715_v47, 4  ;;  %v725_v6 = vrot.slane %v724_v23, 4  ;;  %v788_v19 = vrot.slane %v787_v15, 4  ;;  %v797_v5 = vrot.slane %v796_v7, 4  ;;  %1346 = vmatpush.bf16.msrb.mxu1 %v1741_v10 }
 0x2cc   : > { %v2900_v43 = vadd.f32 %v774_v14, %v773_v16  ;;  %v2902_v38 = vadd.f32 %v783_v53, %v782_v30  ;;  %v2904_v8 = vmax.f32 %v845_v22, %v846_v24  ;;  %v855_v39 = vrot.slane %v854_v31, 1 }
 0x2cd   : > { %v717_v42 = vadd.f32 %v716_v28, %v715_v47  ;;  %v726_v34 = vadd.f32 %v725_v6, %v724_v23  ;;  %v789_v41 = vmax.f32 %v787_v15, %v788_v19  ;;  %v798_v35 = vmax.f32 %v796_v7, %v797_v5  ;;  %v655_v46 = vpop.permute.xlu1 %654  ;;  %1359 = vmatpush.bf16.msrb.mxu2 %v1805_v11  ;;  %v1932_v5 = vld [vmem:[#allocation8 + $0xa4] sm:$0xf] }
 0x2ce   : > { %v2910_v51 = vmul.f32 %v2089_v21, %v655_v46  ;;  %v2913_v10 = vmul.f32 %v2090_v26, %v655_v46  ;;  %1372 = vmatpush.bf16.msrb.mxu3 %v1869_v27  ;;  %v1669_v4 = vor.u32 %v1916_v60, %v1666_v29  ;;  %v1730_v29 = vld [vmem:[#allocation8 + $0xa8] sm:$0xf0]  ;;  %v856_v21 = vmax.f32 %v854_v31, %v855_v39  ;;  %v1946_v31 = vld [vmem:[#allocation8 + $0x114] sm:$0xf]  ;;  %v1786_v39 = vld [vmem:[#allocation8 + $0x118] sm:$0xf0] }
 0x2cf   : > { %v718_v25 = vrot.slane %v717_v42, 2  ;;  %v727_v12 = vrot.slane %v726_v34, 2  ;;  %v790_v3 = vrot.slane %v789_v41, 2  ;;  %v799_v48 = vrot.slane %v798_v35, 2  ;;  %v1794_v46 = vld [vmem:[#allocation8 + $0x128] sm:$0xf0] }
 0x2d0   : > { %3095 = vst [vmem:[#allocation30_spill] sm:$0xff] %v2910_v51  ;;  %v751_v62 = vadd.f32 %v2810_v45, %v2910_v51  ;;  %v760_v16 = vadd.f32 %v2814_v36, %v2913_v10  ;;  %v823_v30 = vmax.f32 %v2833_v50, %v2910_v51  ;;  %v832_v22 = vmax.f32 %v2839_v44, %v2913_v10  ;;  %v1948_v44 = vld [vmem:[#allocation8 + $0x124] sm:$0xf]  ;;  %v1858_v26 = vld [vmem:[#allocation8 + $0x1a8] sm:$0xf0] }
 0x2d1   : > { %3096 = vst [vmem:[#allocation31_spill] sm:$0xff] %v2913_v10  ;;  %1334 = vmatpush.bf16.msrb.mxu0 %v1669_v4  ;;  %v719_v11 = vadd.f32 %v718_v25, %v717_v42  ;;  %v728_v27 = vadd.f32 %v727_v12, %v726_v34  ;;  %v791_v47 = vmax.f32 %v789_v41, %v790_v3  ;;  %v1964_v42 = vld [vmem:[#allocation8 + $0x1a4] sm:$0xf]  ;;  %v1914_v4 = vld [vmem:[#allocation8 + $0x14] sm:$0xf] }
 0x2d2   : > { %v800_v23 = vmax.f32 %v798_v35, %v799_v48  ;;  %v752_v15 = vrot.slane %v751_v62, 4  ;;  %v761_v7 = vrot.slane %v760_v16, 4  ;;  %v824_v14 = vrot.slane %v823_v30, 4  ;;  %v1658_v25 = vld [vmem:[#allocation8 + $0x18] sm:$0xf0] }
 0x2d3   : > { %v833_v53 = vrot.slane %v832_v22, 4  ;;  %v720_v24 = vrot.slane %v719_v11, 1  ;;  %v729_v45 = vrot.slane %v728_v27, 1  ;;  %v792_v60 = vrot.slane %v791_v47, 1  ;;  %v1944_v51 = vld [vmem:[#allocation8 + $0x104] sm:$0xf] }
 0x2d4   : > { %v801_v28 = vrot.slane %v800_v23, 1  ;;  %v753_v36 = vadd.f32 %v752_v15, %v751_v62  ;;  %v762_v6 = vadd.f32 %v761_v7, %v760_v16  ;;  %v825_v19 = vmax.f32 %v823_v30, %v824_v14  ;;  %v1930_v62 = vld [vmem:[#allocation8 + $0x94] sm:$0xf] }
 0x2d5   : > { %v834_v50 = vmax.f32 %v832_v22, %v833_v53  ;;  %v721_v34 = vadd.f32 %v720_v24, %v719_v11  ;;  %v730_v41 = vadd.f32 %v729_v45, %v728_v27  ;;  %v793_v35 = vmax.f32 %v791_v47, %v792_v60  ;;  %v1722_v27 = vld [vmem:[#allocation8 + $0x98] sm:$0xf0]  ;;  %v1962_v53 = vld [vmem:[#allocation8 + $0x194] sm:$0xf]  ;;  %v1912_v45 = vld [vmem:[#allocation8 + $0x4] sm:$0xf] }
 0x2d6   : > { %v754_v12 = vrot.slane %v753_v36, 2  ;;  %v763_v3 = vrot.slane %v762_v6, 2  ;;  %v826_v48 = vrot.slane %v825_v19, 2  ;;  %v802_v11 = vmax.f32 %v800_v23, %v801_v28  ;;  %v1850_v24 = vld [vmem:[#allocation8 + $0x198] sm:$0xf0] }
 0x2d7   : > { %v835_v32 = vrot.slane %v834_v50, 2  ;;  %v865_v16 = vsel %vm463_vm3, %v2877_v17, %v721_v34  ;;  %v868_v30 = vsel %vm463_vm3, %v2880_v49, %v730_v41  ;;  %v881_v22 = vsel %vm463_vm3, %v2883_v57, %v793_v35  ;;  %v1650_v60 = vld [vmem:[#allocation8 + $0x8] sm:$0xf0]  ;;  %v1928_v49 = vld [vmem:[#allocation8 + $0x84] sm:$0xf] }
 0x2d8   : > { %v755_v47 = vadd.f32 %v754_v12, %v753_v36  ;;  %v764_v15 = vadd.f32 %v763_v3, %v762_v6  ;;  %v827_v7 = vmax.f32 %v825_v19, %v826_v48  ;;  %v1733_v37 = vor.u32 %v1932_v5, %v1730_v29  ;;  %v1714_v41 = vld [vmem:[#allocation8 + $0x88] sm:$0xf0]  ;;  %v1960_v12 = vld [vmem:[#allocation8 + $0x184] sm:$0xf] }
 0x2d9   : > { %v836_v14 = vmax.f32 %v834_v50, %v835_v32  ;;  %v1797_v17 = vor.u32 %v1948_v44, %v1794_v46  ;;  %v1861_v34 = vor.u32 %v1964_v42, %v1858_v26  ;;  %v1661_v10 = vor.u32 %v1914_v4, %v1658_v25  ;;  %v1842_v3 = vld [vmem:[#allocation8 + $0x188] sm:$0xf0] }
 0x2da   : > { %v756_v57 = vrot.slane %v755_v47, 1  ;;  %v765_v23 = vrot.slane %v764_v15, 1  ;;  %v828_v28 = vrot.slane %v827_v7, 1  ;;  %v884_v36 = vsel %vm463_vm3, %v2907_v33, %v802_v11  ;;  %1347 = vmatpush.bf16.msrb.mxu1 %v1733_v37 }
 0x2db   : > { %v837_v35 = vrot.slane %v836_v14, 1  ;;  %1360 = vmatpush.bf16.msrb.mxu2 %v1797_v17  ;;  %v1725_v32 = vor.u32 %v1930_v62, %v1722_v27  ;;  %v1789_v6 = vor.u32 %v1946_v31, %v1786_v39  ;;  %1373 = vmatpush.bf16.msrb.mxu3 %v1861_v34  ;;  %v1853_v44 = vor.u32 %v1962_v53, %v1850_v24 }
 0x2dc   : > { %v757_v19 = vadd.f32 %v756_v57, %v755_v47  ;;  %v766_v50 = vadd.f32 %v765_v23, %v764_v15  ;;  %v829_v5 = vmax.f32 %v827_v7, %v828_v28  ;;  %1335 = vmatpush.bf16.msrb.mxu0 %v1661_v10  ;;  %v1653_v46 = vor.u32 %v1912_v45, %v1650_v60 }
 0x2dd   : > { %v838_v29 = vmax.f32 %v836_v14, %v837_v35  ;;  %v1717_v42 = vor.u32 %v1928_v49, %v1714_v41  ;;  %v1781_v26 = vor.u32 %v1944_v51, %v1778_v63  ;;  %v1845_v11 = vor.u32 %v1960_v12, %v1842_v3 }
 0x2de   : > { %v866_v4 = vsel %vm465_vm4, %v757_v19, %v865_v16  ;;  %v869_v25 = vsel %vm465_vm4, %v766_v50, %v868_v30  ;;  %v882_v33 = vsel %vm465_vm4, %v829_v5, %v881_v22  ;;  %1348 = vmatpush.bf16.msrb.mxu1 %v1725_v32 }
 0x2df   : > { %v885_v37 = vsel %vm465_vm4, %v838_v29, %v884_v36  ;;  %v867_v48 = vsel %vm467_vm5, %v2900_v43, %v866_v4  ;;  %v870_v10 = vsel %vm467_vm5, %v2902_v38, %v869_v25  ;;  %v883_v62 = vsel %vm467_vm5, %v2904_v8, %v882_v33  ;;  %1361 = vmatpush.bf16.msrb.mxu2 %v1789_v6 }
 0x2e0   : > { %v886_v63 = vsel %vm467_vm5, %v856_v21, %v885_v37  ;;  %v889_v51 = vpack.c.bf16 %v867_v48, %v867_v48  ;;  %v890_v16 = vpack.c.bf16 %v870_v10, %v870_v10  ;;  %v891_v30 = vpack.c.bf16 %v883_v62, %v883_v62  ;;  %1374 = vmatpush.bf16.msrb.mxu3 %v1853_v44 }
 0x2e1   : > { %v892_v22 = vpack.c.bf16 %v886_v63, %v886_v63  ;;  %1336 = vmatpush.bf16.msrb.mxu0 %v1653_v46 }
 0x2e2   : > { %1285 = vmatmul.bf16.vlgmr.msra.gmra.mxu0 %v889_v51  ;;  %1298 = vmatmul.bf16.vlgmr.msra.gmra.mxu1 %v890_v16 }
 0x2e3   : > { %1311 = vmatmul.bf16.vlgmr.msra.gmra.mxu2 %v891_v30  ;;  %1324 = vmatmul.bf16.vlgmr.msra.gmra.mxu3 %v892_v22 }
 0x2e4   : > { %1349 = vmatpush.bf16.msrb.mxu1 %v1717_v42  ;;  %1362 = vmatpush.bf16.msrb.mxu2 %v1781_v26 }
 0x2e5   : > { %1375 = vmatpush.bf16.msrb.mxu3 %v1845_v11 }
 0x2f2   : > { %1337 = vmatmul.bf16.vlgmr.msrb.gmra.mxu0 %v889_v51  ;;  %1350 = vmatmul.bf16.vlgmr.msrb.gmra.mxu1 %v890_v16 }
 0x2f3   : > { %1363 = vmatmul.bf16.vlgmr.msrb.gmra.mxu2 %v891_v30  ;;  %1376 = vmatmul.bf16.vlgmr.msrb.gmra.mxu3 %v892_v22 }
 0x35f   : > { %v1286_v43 = vpop.f32.mrf.mxu0  ;;  %v1299_v38 = vpop.f32.mrf.mxu1 }
 0x360   : > { %v1300_v8 = vadd.f32 %v1299_v38, %v1286_v43 }
 0x366   : > { %v1312_v21 = vpop.f32.mrf.mxu2  ;;  %v1325_v27 = vpop.f32.mrf.mxu3 }
 0x367   : > { %v1313_v31 = vadd.f32 %v1312_v21, %v1300_v8  ;;  %v1288_v39 = vpop.f32.mrf.mxu0  ;;  %v1301_v47 = vpop.f32.mrf.mxu1 }
 0x369   : > { %v1326_v15 = vadd.f32 %v1325_v27, %v1313_v31 }
 0x36b   : > { %v1902_v7 = vmul.f32 -1.442695, %v1326_v15 }
 0x36d   : > { %2079 = vpow2.f32 %v1902_v7 }
 0x36e   : > { %v1314_v14 = vpop.f32.mrf.mxu2  ;;  %v1327_v53 = vpop.f32.mrf.mxu3 }
 0x36f   : > { %v1338_v24 = vpop.f32.mrf.mxu0  ;;  %v1351_v45 = vpop.f32.mrf.mxu1 }
 0x370   : > { %v1352_v17 = vadd.f32 %v1351_v45, %v1338_v24 }
 0x373   : > { %v2080_v60 = vpop.eup %2079 }
 0x374   : > { %v1387_v28 = vadd.f32 1.0, %v2080_v60 }
 0x376   : > { %v1364_v34 = vpop.f32.mrf.mxu2  ;;  %v1377_v49 = vpop.f32.mrf.mxu3  ;;  %2081 = vrcp.f32 %v1387_v28  ;;  %vm1394_vm1 = vweird.f32 %v1387_v28  ;;  %v1400_v3 = vand.u32 2147483648, %v1387_v28  ;;  %v1398_v48 = vand.u32 2147483647, %v1387_v28 }
 0x377   : > { %v1365_v41 = vadd.f32 %v1364_v34, %v1352_v17  ;;  %v1340_v57 = vpop.f32.mrf.mxu0  ;;  %v1353_v23 = vpop.f32.mrf.mxu1  ;;  %v3097_v34 = vld [vmem:[#allocation22_spill] sm:$0xff] }
 0x378   : > { %v1401_v16 = vor.u32 1.1754944e-38, %v1400_v3  ;;  %vm1399_vm10 = vcmp.eq.f32.partialorder %v1398_v48, 8.507059e+37  ;;  %v3099_v57 = vld [vmem:[#allocation19_spill] sm:$0xff]  ;;  %v3109_v3 = vld [vmem:[#allocation26_spill] sm:$0xff] }
 0x379   : > { %v1378_v35 = vadd.f32 %v1377_v49, %v1365_v41  ;;  %v3098_v41 = vld [vmem:[#allocation18_spill] sm:$0xff] }
 0x37b   : > { %v1903_v36 = vmul.f32 -1.442695, %v1378_v35 }
 0x37c   : > { %v2082_v19 = vpop.eup %2081 }
 0x37d   : > { %2083 = vpow2.f32 %v1903_v36  ;;  %v1390_v29 = vmul.f32 %v2082_v19, %v1387_v28  ;;  %vm1395_vm15 = vweird.f32 %v2082_v19 }
 0x37e   : > { %v1366_v32 = vpop.f32.mrf.mxu2  ;;  %v1379_v6 = vpop.f32.mrf.mxu3  ;;  %vm1396_vm2 = vmor %vm1394_vm1, %vm1395_vm15 }
 0x37f   : > { %v1391_v44 = vsub.f32 1.0, %v1390_v29  ;;  %v3102_v32 = vld [vmem:[#allocation23_spill] sm:$0xff]  ;;  %v3104_v29 = vld [vmem:[#allocation30_spill] sm:$0xff] }
 0x381   : > { %v1392_v42 = vmul.f32 %v2082_v19, %v1391_v44 }
 0x383   : > { %v2084_v50 = vpop.eup %2083  ;;  %v1393_v33 = vadd.f32 %v2082_v19, %v1392_v42 }
 0x384   : > { %v1388_v5 = vadd.f32 1.0, %v2084_v50  ;;  %v3103_v50 = vld [vmem:[#allocation24_spill] sm:$0xff] }
 0x385   : > { %v1397_v63 = vsel %vm1396_vm2, %v2082_v19, %v1393_v33 }
 0x386   : > { %2085 = vrcp.f32 %v1388_v5  ;;  %v1415_v25 = vand.u32 2147483648, %v1388_v5  ;;  %v1413_v12 = vand.u32 2147483647, %v1388_v5  ;;  %vm1409_vm6 = vweird.f32 %v1388_v5 }
 0x387   : > { %v1402_v11 = vsel %vm1399_vm10, %v1401_v16, %v1397_v63  ;;  %v3111_v63 = vld [vmem:[#allocation28_spill] sm:$0xff]  ;;  %v3112_v16 = vld [vmem:[#allocation29_spill] sm:$0xff] }
 0x388   : > { %v1416_v62 = vor.u32 1.1754944e-38, %v1415_v25  ;;  %vm1414_vm8 = vcmp.eq.f32.partialorder %v1413_v12, 8.507059e+37  ;;  %v3107_v25 = vld [vmem:[#allocation21_spill] sm:$0xff] }
 0x38c   : > { %v2086_v46 = vpop.eup %2085 }
 0x38d   : > { %v1405_v26 = vmul.f32 %v2086_v46, %v1388_v5  ;;  %vm1410_vm0 = vweird.f32 %v2086_v46 }
 0x38e   : > { %vm1411_vm7 = vmor %vm1409_vm6, %vm1410_vm0 }
 0x38f   : > { %v1406_v4 = vsub.f32 1.0, %v1405_v26  ;;  %v3106_v26 = vld [vmem:[#allocation20_spill] sm:$0xff] }
 0x391   : > { %v1407_v37 = vmul.f32 %v2086_v46, %v1406_v4 }
 0x393   : > { %v1408_v10 = vadd.f32 %v2086_v46, %v1407_v37  ;;  %v3108_v37 = vld [vmem:[#allocation25_spill] sm:$0xff] }
 0x395   : > { %v1412_v51 = vsel %vm1411_vm7, %v2086_v46, %v1408_v10  ;;  %v3105_v46 = vld [vmem:[#allocation31_spill] sm:$0xff] }
 0x396   : > { %v1417_v30 = vsel %vm1414_vm8, %v1416_v62, %v1412_v51  ;;  %v3110_v10 = vld [vmem:[#allocation27_spill] sm:$0xff] }
 0x397   : > { %v1421_v22 = vrot.slane %v1417_v30, 7 }
 0x399   : > { %v1423_v43 = vsel %vm1422_vm9, %v1402_v11, %v1421_v22  ;;  %v1424_v38 = vsel %vm463_vm3, %v1402_v11, %v1421_v22 }
 0x39a   : > { %v1430_v8 = vperm.slane %v1423_v43, 0  ;;  %v1425_v21 = vrot.slane %v1424_v38, 1  ;;  %v1431_v27 = vperm.slane %v1423_v43, 1 }
 0x39c   : > { %v1446_v31 = vmul.f32 %v1430_v8, %v2697_v61  ;;  %v1447_v39 = vmul.f32 %v1431_v27, %v2710_v9  ;;  %v1448_v47 = vmul.f32 %v1430_v8, %v2683_v56  ;;  %v1449_v15 = vmul.f32 %v1431_v27, %v2690_v20 }
 0x39d   : > { %v1432_v7 = vperm.slane %v1425_v21, 0  ;;  %v1450_v14 = vmul.f32 %v1430_v8, %v2755_v13  ;;  %v1426_v61 = vsel %vm465_vm4, %v1402_v11, %v1421_v22  ;;  %v1433_v56 = vperm.slane %v1425_v21, 1 }
 0x39e   : > { %1478 = vst [vmem:[%s2950_s21] sm:$0xff] %v1446_v31  ;;  %v1451_v20 = vmul.f32 %v1431_v27, %v2763_v2  ;;  %v1452_v9 = vmul.f32 %v1430_v8, %v2887_v1  ;;  %v1453_v13 = vmul.f32 %v1431_v27, %v2890_v58  ;;  %v1427_v53 = vrot.slane %v1426_v61, 2 }
 0x39f   : > { %1479 = vst [vmem:[%s2950_s21 + $0x8] sm:$0xff] %v1447_v39  ;;  %v1454_v24 = vmul.f32 %v1432_v7, %v2679_v59  ;;  %v1455_v45 = vmul.f32 %v1433_v56, %v2686_v55  ;;  %v1456_v2 = vmul.f32 %v1432_v7, %v2694_v0  ;;  %v1457_v1 = vmul.f32 %v1433_v56, %v2701_v40 }
 0x3a0   : > { %1480 = vst [vmem:[%s2950_s21 + $0x10] sm:$0xff] %v1448_v47  ;;  %v1434_v58 = vperm.slane %v1427_v53, 0  ;;  %v1458_v60 = vmul.f32 %v1432_v7, %v2729_v54  ;;  %v1428_v59 = vsel %vm467_vm5, %v1402_v11, %v1421_v22  ;;  %v1435_v17 = vperm.slane %v1427_v53, 1  ;;  %v3113_v22 = vld [vmem:[#allocation15_spill] sm:$0xff] }
 0x3a1   : > { %1481 = vst [vmem:[%s2950_s21 + $0x18] sm:$0xff] %v1449_v15  ;;  %v1459_v55 = vmul.f32 %v1433_v56, %v2732_v52  ;;  %v1460_v0 = vmul.f32 %v1432_v7, %v2767_v18  ;;  %v1461_v40 = vmul.f32 %v1433_v56, %v3097_v34  ;;  %v1429_v49 = vrot.slane %v1428_v59, 3  ;;  %v3100_v52 = vld [vmem:[#allocation16_spill] sm:$0xff]  ;;  %v3101_v18 = vld [vmem:[#allocation17_spill] sm:$0xff] }
 0x3a2   : > { %1482 = vst [vmem:[%s2950_s21 + $0x20] sm:$0xff] %v1450_v14  ;;  %v1462_v54 = vmul.f32 %v1434_v58, %v3098_v41  ;;  %v1463_v23 = vmul.f32 %v1435_v17, %v3099_v57  ;;  %v1464_v28 = vmul.f32 %v1434_v58, %v3100_v52  ;;  %v1465_v35 = vmul.f32 %v1435_v17, %v3101_v18 }
 0x3a3   : > { %1483 = vst [vmem:[%s2950_s21 + $0x28] sm:$0xff] %v1451_v20  ;;  %v1436_v36 = vperm.slane %v1429_v49, 0  ;;  %v1466_v6 = vmul.f32 %v1434_v58, %v3102_v32  ;;  %v1437_v19 = vperm.slane %v1429_v49, 1  ;;  %v1467_v5 = vmul.f32 %v1435_v17, %v3103_v50 }
 0x3a4   : > { %1484 = vst [vmem:[%s2950_s21 + $0x30] sm:$0xff] %v1452_v9  ;;  %v1468_v44 = vmul.f32 %v1434_v58, %v3104_v29  ;;  %v1469_v42 = vmul.f32 %v1435_v17, %v3105_v46 }
 0x3a5   : > { %1485 = vst [vmem:[%s2950_s21 + $0x38] sm:$0xff] %v1453_v13  ;;  %v1470_v4 = vmul.f32 %v1436_v36, %v3106_v26  ;;  %v1471_v33 = vmul.f32 %v1437_v19, %v3107_v25  ;;  %v1472_v12 = vmul.f32 %v1436_v36, %v3108_v37  ;;  %v1473_v48 = vmul.f32 %v1437_v19, %v3109_v3 }
 0x3a6   : > { %1486 = vst [vmem:[%s2950_s21 + $0x40] sm:$0xff] %v1454_v24  ;;  %v1474_v62 = vmul.f32 %v1436_v36, %v3110_v10  ;;  %v1475_v51 = vmul.f32 %v1437_v19, %v3111_v63  ;;  %v1476_v30 = vmul.f32 %v1436_v36, %v3112_v16  ;;  %v1477_v11 = vmul.f32 %v1437_v19, %v3113_v22 }
 0x3a7   : > { %1487 = vst [vmem:[%s2950_s21 + $0x48] sm:$0xff] %v1455_v45 }
 0x3a8   : > { %1488 = vst [vmem:[%s2950_s21 + $0x50] sm:$0xff] %v1456_v2 }
 0x3a9   : > { %1489 = vst [vmem:[%s2950_s21 + $0x58] sm:$0xff] %v1457_v1 }
 0x3aa   : > { %1490 = vst [vmem:[%s2950_s21 + $0x60] sm:$0xff] %v1458_v60 }
 0x3ab   : > { %1491 = vst [vmem:[%s2950_s21 + $0x68] sm:$0xff] %v1459_v55 }
 0x3ac   : > { %1492 = vst [vmem:[%s2950_s21 + $0x70] sm:$0xff] %v1460_v0 }
 0x3ad   : > { %1493 = vst [vmem:[%s2950_s21 + $0x78] sm:$0xff] %v1461_v40 }
 0x3ae   : > { %1494 = vst [vmem:[%s2950_s21 + $0x80] sm:$0xff] %v1462_v54 }
 0x3af   : > { %1495 = vst [vmem:[%s2950_s21 + $0x88] sm:$0xff] %v1463_v23 }
 0x3b0   : > { %1496 = vst [vmem:[%s2950_s21 + $0x90] sm:$0xff] %v1464_v28 }
 0x3b1   : > { %1497 = vst [vmem:[%s2950_s21 + $0x98] sm:$0xff] %v1465_v35 }
 0x3b2   : > { %1498 = vst [vmem:[%s2950_s21 + $0xa0] sm:$0xff] %v1466_v6 }
 0x3b3   : > { %1499 = vst [vmem:[%s2950_s21 + $0xa8] sm:$0xff] %v1467_v5 }
 0x3b4   : > { %1500 = vst [vmem:[%s2950_s21 + $0xb0] sm:$0xff] %v1468_v44 }
 0x3b5   : > { %1501 = vst [vmem:[%s2950_s21 + $0xb8] sm:$0xff] %v1469_v42 }
 0x3b6   : > { %1502 = vst [vmem:[%s2950_s21 + $0xc0] sm:$0xff] %v1470_v4 }
 0x3b7   : > { %1503 = vst [vmem:[%s2950_s21 + $0xc8] sm:$0xff] %v1471_v33 }
 0x3b8   : > { %1504 = vst [vmem:[%s2950_s21 + $0xd0] sm:$0xff] %v1472_v12 }
 0x3b9   : > { %1505 = vst [vmem:[%s2950_s21 + $0xd8] sm:$0xff] %v1473_v48 }
 0x3ba   : > { %1506 = vst [vmem:[%s2950_s21 + $0xe0] sm:$0xff] %v1474_v62 }
 0x3bb   : > { %1507 = vst [vmem:[%s2950_s21 + $0xe8] sm:$0xff] %v1475_v51 }
 0x3bc   : > { %1508 = vst [vmem:[%s2950_s21 + $0xf0] sm:$0xff] %v1476_v30 }
 0x3bd   : > { %1509 = vst [vmem:[%s2950_s21 + $0xf8] sm:$0xff] %v1477_v11 }
 0x3be   : > { %2238 = shalt.err (!%p2235_p11)
}
 0x3bf   : > { %s2295_s8 = smov 256   ;;  %s2296_s14 = smov 16  }
 0x3c0   : > { %1992 = dma.vmem_to_hbm [thread:$0]  (%p2405_p7), %s1525_s19, 4096, %s1527_s13, %s1511_s24, %s2295_s8, %s2295_s8, %s2296_s14  }
 0x3c1 PF: > { %s1541_s20 = sand.u32 1, %s2273_s15   ;;  %p3114_p12 = scmp.ge.s32.totalorder %s2285_s18, 2 }
 0x3c2   : > { %s1542_s21 = scalar_lea.sflag [#allocation4], %s1541_s20 }
 0x3c3   : > { %p2009_p13 = pnand %p3114_p12, %p2357_p6 }
 0x3c5   : > { %p2010_p0 = pneg %p2009_p13 }
 0x3c7   : > { %2268 = dma.done.wait (%p2010_p0), %s1542_s21, 4096  }
 0x3c8   : > { %2270 = vsyncadd (%p2010_p0), %s1542_s21, 4294963200  ;;  %p19_p3 = scmp.ge.s32.totalorder %s2391_s23, 4   ;;  %s3115_s15 = smov %s2277_s16 }
 0x3c9   : > { %s3116_s16 = smov %s2281_s17  ;;  %s3117_s17 = smov %s2401_s27 }
 0x3ca   : > { %s3118_s18 = smov %s2391_s23  ;;  %21 = sbr.rel (!%p19_p3) target bundleno = 7 (0x7), region = 93 }
 0x3cf   :  { %1548 = vsyncpa [#allocation3], 1 }
 0x3d0   :  { %1550 = vsyncpa [#allocation3 + $0x1], 1 }
 0x3d1   :  { %1551 = vsyncpa [#allocation6], 1 }
 0x3d2   :  { %1552 = vsyncpa [#allocation9], 1 }
 0x3d3   :  { %1553 = vsyncpa [#allocation4], 1 }
 0x3d4   :  { %1555 = vsyncpa [#allocation4 + $0x1], 1 }

</bundles_post_ra>
